<compile_context>
chip_gen: v5e
topology: v5e:2x2
jax: 0.10.0
libtpu: 0.0.40
codegen_flags: <defaults>
</compile_context>

<pallas_src>
import math
import jax
import jax.numpy as jnp
from jax.experimental import pallas as pl
from jax.experimental.pallas import tpu as pltpu


# ----------------------------------------------------------------------------
# Fused Pallas kernel: encoder -> num_layer ChebyConv2 layers -> final encoder
# ----------------------------------------------------------------------------
def _fused_forward_kernel(num_layer, k, n_valid, n_pad):
    def kernel(coe_ref, x_ref, enc_w_ref, enc_b_ref, lap_hbm_ref,
               fin_w_ref, fin_b_ref, o_ref, lap_ref, h_ref, lap_sem):
        # Start the single-buffered Laplacian HBM->VMEM DMA immediately so it overlaps
        # with the feature-encoder matmul below.
        lap_cp = pltpu.make_async_copy(lap_hbm_ref, lap_ref, lap_sem)
        lap_cp.start()

        # --- feat_encoder: h = relu(x @ W_enc + b_enc) ------------------------------
        h = jnp.dot(x_ref[...], enc_w_ref[...], preferred_element_type=jnp.float32)
        h = jnp.maximum(h + enc_b_ref[...], 0.0)
        if n_valid < n_pad:
            # Zero the zero-padded node rows (the bias broadcast leaves relu(b_enc) there).
            row = jax.lax.broadcasted_iota(jnp.int32, h.shape, 0)
            h = jnp.where(row < n_valid, h, 0.0)
        h_ref[...] = h.astype(h_ref.dtype)            # hidden state carried in bf16

        lap_cp.wait()                                  # L now resident for every layer

        # --- ChebyConv2 layers: L stays resident in VMEM (bf16 MXU, f32 accumulate) --
        for layer in range(num_layer):                 # static unroll, num_layer is small
            tx0_b = h_ref[...]                         # bf16 MXU operand
            tx0_f = tx0_b.astype(jnp.float32)
            tx1_f = jnp.dot(lap_ref[...], tx0_b, preferred_element_type=jnp.float32)
            # coe[:, 0] already carries the ChebNetII 0.5 factor (folded in the wrapper).
            acc = coe_ref[layer, 0] * tx0_f + coe_ref[layer, 1] * tx1_f
            tx1_b = tx1_f.astype(jnp.bfloat16)
            for j in range(2, k + 1):                  # static unroll, k is small
                tx2_f = 2.0 * jnp.dot(lap_ref[...], tx1_b,
                                      preferred_element_type=jnp.float32) - tx0_f
                acc = acc + coe_ref[layer, j] * tx2_f
                tx0_f = tx1_f
                tx1_f = tx2_f
                tx1_b = tx2_f.astype(jnp.bfloat16)
            # F.relu(conv(...)) fused; layer output carried in the bf16 VMEM scratch
            h_ref[...] = jnp.maximum(acc, 0.0).astype(h_ref.dtype)

        # --- final_encoder: logits = h @ W_fin + b_fin (lane-dense padded store) -----
        y = jnp.dot(h_ref[...].astype(jnp.float32), fin_w_ref[...],
                    preferred_element_type=jnp.float32)
        o_ref[...] = (y + fin_b_ref[...]).astype(o_ref.dtype)

    return kernel


def _round_up(v, m):
    return (v + m - 1) // m * m


def _pad2(a, rows, cols):
    r, c = a.shape
    return jnp.pad(a, ((0, rows - r), (0, cols - c)))


# ----------------------------------------------------------------------------
# One-time (per model) preparation of static tensors — hoisted out of forward
# ----------------------------------------------------------------------------
def prepare_chebynet2(params, cheb_vals, scaled_lap, k):
    num_layer = len(params["layer_gammas"])
    n = scaled_lap.shape[0]
    f, h = params["enc_w"].shape
    c = params["fin_w"].shape[1]

    np_ = _round_up(n, 128)
    fp = _round_up(f, 128)
    # L @ tx carries all the FLOPs; on v6e/v7x the MXU output is 256 lanes wide, so pad the
    # hidden dim to a 256-multiple once it exceeds 128 (128-multiples are native on v5e).
    hp = _round_up(h, 256) if h > 128 else _round_up(h, 128)
    cp = _round_up(c, 128)

    # Tiny (k+1)x(k+1) coefficient interpolation stays in plain-JAX glue (done once).
    coes = jnp.stack([(2.0 / (k + 1)) * (cheb_vals @ jax.nn.relu(g))
                      for g in params["layer_gammas"]])          # (num_layer, k+1)
    coes = coes.at[:, 0].mul(0.5)                                # fold ChebNetII 0.5 factor

    return {
        "n": n, "f": f, "h": h, "c": c,
        "np_": np_, "fp": fp, "hp": hp, "cp": cp,
        "k": k, "num_layer": num_layer,
        "coes": coes,
        "enc_w": _pad2(params["enc_w"], fp, hp),
        "enc_b": _pad2(params["enc_b"].reshape(1, -1), 1, hp),
        "fin_w": _pad2(params["fin_w"], hp, cp),
        "fin_b": _pad2(params["fin_b"].reshape(1, -1), 1, cp),
        # bf16 L: half HBM/VMEM traffic, native MXU input.
        # TODO(synk): fp8 (v7x) / int8 (v5e/v6e) quantization of L would double resident N again.
        "lap": _pad2(scaled_lap, np_, np_).astype(jnp.bfloat16),
    }


# ----------------------------------------------------------------------------
# Fused forward
# ----------------------------------------------------------------------------
def chebynet2_forward(prep, x):
    n, c = prep["n"], prep["c"]
    np_, fp, hp, cp = prep["np_"], prep["fp"], prep["hp"], prep["cp"]
    k, num_layer = prep["k"], prep["num_layer"]

    x_p = _pad2(x, np_, fp)

    # Explicit VMEM budget: single-buffered bf16 L + bf16 hidden scratch + (double-buffered)
    # small pipelined operands + f32 temporaries, with headroom; capped at 64 MiB (v7x physical).
    vmem_bytes = (
        np_ * np_ * 2              # resident Laplacian (bf16, single buffer)
        + np_ * hp * 2             # resident hidden state (bf16)
        + 2 * np_ * fp * 4         # x
        + 2 * fp * hp * 4          # enc_w
        + 2 * hp * cp * 4          # fin_w
        + 2 * np_ * cp * 4         # out
        + 6 * np_ * hp * 4         # f32 acc / Chebyshev carries / bf16 casts
    )
    vmem_bytes = min(int(vmem_bytes * 3 // 2) + (2 << 20), 64 << 20)

    flops = (2 * np_ * fp * hp
             + 2 * num_layer * k * np_ * np_ * hp
             + 2 * np_ * hp * cp)
    bytes_accessed = (np_ * np_ * 2 + np_ * fp * 4 + fp * hp * 4
                      + hp * cp * 4 + np_ * cp * 4)

    out_p = pl.pallas_call(
        _fused_forward_kernel(num_layer, k, n, np_),
        out_shape=jax.ShapeDtypeStruct((np_, cp), jnp.float32),
        grid=(1,),
        in_specs=[
            pl.BlockSpec(memory_space=pltpu.MemorySpace.SMEM),    # coes (num_layer, k+1)
            pl.BlockSpec((np_, fp), lambda i: (0, 0)),            # x
            pl.BlockSpec((fp, hp), lambda i: (0, 0)),             # enc_w
            pl.BlockSpec((1, hp), lambda i: (0, 0)),              # enc_b
            pl.BlockSpec(memory_space=pl.ANY),                    # L: manual DMA, no double buffer
            pl.BlockSpec((hp, cp), lambda i: (0, 0)),             # fin_w
            pl.BlockSpec((1, cp), lambda i: (0, 0)),              # fin_b
        ],
        out_specs=pl.BlockSpec((np_, cp), lambda i: (0, 0)),
        scratch_shapes=[
            pltpu.VMEM((np_, np_), jnp.bfloat16),                 # resident Laplacian
            pltpu.VMEM((np_, hp), jnp.bfloat16),                  # resident hidden state
            pltpu.SemaphoreType.DMA(()),                          # L copy semaphore
        ],
        compiler_params=pltpu.CompilerParams(
            dimension_semantics=("arbitrary",),
            vmem_limit_bytes=vmem_bytes),
        cost_estimate=pl.CostEstimate(flops=flops, transcendentals=0,
                                      bytes_accessed=bytes_accessed),
    )(prep["coes"], x_p, prep["enc_w"], prep["enc_b"], prep["lap"],
      prep["fin_w"], prep["fin_b"])

    return out_p[:n, :c]


# ----------------------------------------------------------------------------
# ChebyNet2 glue: Chebyshev-node table, params, pure-JAX reference
# ----------------------------------------------------------------------------
def chebynodes_vals_table(k):
    nodes = [math.cos((j + 0.5) * math.pi / (k + 1)) for j in range(k + 1)]
    cols = []
    for x_j in nodes:
        vals = []
        for j in range(k + 1):
            if j == 0:
                vals.append(1.0)
            elif j == 1:
                vals.append(x_j)
            else:
                vals.append(2.0 * x_j * vals[j - 1] - vals[j - 2])
        cols.append(vals)
    # chebynodes_vals[j, i] = T_j(x_i) (order j = rows, node i = cols), as in the module
    return jnp.asarray(cols, dtype=jnp.float32).T


def init_params(key, num_features, num_classes, hidden_dim, k, num_layer):
    k1, k2, k3, k4, k5 = jax.random.split(key, 5)
    gks = jax.random.split(k5, num_layer)
    return {
        "enc_w": jax.random.normal(k1, (num_features, hidden_dim), jnp.float32)
                 / math.sqrt(num_features),
        "enc_b": 0.1 * jax.random.normal(k3, (hidden_dim,), jnp.float32),
        "fin_w": jax.random.normal(k2, (hidden_dim, num_classes), jnp.float32)
                 / math.sqrt(hidden_dim),
        "fin_b": 0.1 * jax.random.normal(k4, (num_classes,), jnp.float32),
        # ChebNetII nominally initializes gamma to ones; a small perturbation is added so the
        # test exercises every Chebyshev order (exactly-ones gammas make coe[j>=1] collapse to 0).
        "layer_gammas": [jnp.ones((k + 1,), jnp.float32)
                         + 0.25 * jax.random.normal(gks[i], (k + 1,), jnp.float32)
                         for i in range(num_layer)],
    }


def chebynet2_reference(params, x, cheb_vals, scaled_lap, k):
    """Pure-JAX f32 reference of the same forward (for correctness checking)."""
    h = jax.nn.relu(x @ params["enc_w"] + params["enc_b"])
    for gamma in params["layer_gammas"]:
        coe = (2.0 / (k + 1)) * (cheb_vals @ jax.nn.relu(gamma))
        tx0 = h
        tx1 = scaled_lap @ h
        out = coe[0] * 0.5 * tx0 + coe[1] * tx1
        for j in range(2, k + 1):
            tx2 = 2.0 * (scaled_lap @ tx1) - tx0
            out = out + coe[j] * tx2
            tx0, tx1 = tx1, tx2
        h = jax.nn.relu(out)
    return h @ params["fin_w"] + params["fin_b"]


# ----------------------------------------------------------------------------
# Main
# ----------------------------------------------------------------------------
if __name__ == "__main__":
    N, NUM_FEATURES, HIDDEN, NUM_CLASSES = 64, 32, 32, 8
    K, NUM_LAYER = 4, 2

    key = jax.random.PRNGKey(0)
    k_adj, k_x, k_par = jax.random.split(key, 3)

    # Deterministic synthetic graph: symmetric adjacency -> normalized Laplacian
    a = (jax.random.uniform(k_adj, (N, N)) < 0.1).astype(jnp.float32)
    a = jnp.maximum(a, a.T) * (1.0 - jnp.eye(N, dtype=jnp.float32))
    deg = a.sum(axis=1)
    d_is = jnp.where(deg > 0, 1.0 / jnp.sqrt(jnp.maximum(deg, 1e-12)), 0.0)
    lap = jnp.eye(N, dtype=jnp.float32) - d_is[:, None] * a * d_is[None, :]

    max_eig = jnp.max(jnp.linalg.eigvalsh(lap))
    scaled_lap = (2.0 / max_eig) * lap - jnp.eye(N, dtype=jnp.float32)   # self.scaled_laplacian

    cheb_vals = chebynodes_vals_table(K)                                  # self.chebynodes_vals
    params = init_params(k_par, NUM_FEATURES, NUM_CLASSES, HIDDEN, K, NUM_LAYER)
    x = jax.random.normal(k_x, (N, NUM_FEATURES), jnp.float32)

    prep = prepare_chebynet2(params, cheb_vals, scaled_lap, K)            # static tensors, once
    out = chebynet2_forward(prep, x)
    out = jax.block_until_ready(out)
    assert out.shape == (N, NUM_CLASSES) and out.dtype == jnp.float32

    # Loose tolerance: the kernel runs the Laplacian / Chebyshev state through the MXU in bf16.
    ref = chebynet2_reference(params, x, cheb_vals, scaled_lap, K)
    assert jnp.allclose(out, ref, atol=2e-1, rtol=1e-1), float(jnp.max(jnp.abs(out - ref)))

    print("KERNEL_OK")
</pallas_src>

<mosaic_0001>
module attributes {stable_mosaic.version = 11 : i64} {
  func.func @kernel(%arg0: i32, %arg1: memref<2x5xf32, #tpu.memory_space<smem>>, %arg2: memref<128x128xf32, #tpu.memory_space<vmem>>, %arg3: memref<128x128xf32, #tpu.memory_space<vmem>>, %arg4: memref<1x128xf32, #tpu.memory_space<vmem>>, %arg5: memref<128x128xbf16, #tpu.memory_space<any>>, %arg6: memref<128x128xf32, #tpu.memory_space<vmem>>, %arg7: memref<1x128xf32, #tpu.memory_space<vmem>>, %arg8: memref<128x128xf32, #tpu.memory_space<vmem>>, %arg9: memref<128x128xbf16, #tpu.memory_space<vmem>>, %arg10: memref<128x128xbf16, #tpu.memory_space<vmem>>, %arg11: memref<!tpu.dma_semaphore, #tpu.memory_space<semaphore_mem>>) attributes {dimension_semantics = [#tpu.dimension_semantics<arbitrary>], iteration_bounds = array<i64: 1>, scalar_prefetch = 0 : i64, scratch_operands = 3 : i64, tpu.core_type = #tpu.core_type<tc>, window_params = [{transform_indices = @transform_0, window_bounds = array<i64: 2, 5>}, {pipeline_mode = #tpu.pipeline_mode<synchronous>, transform_indices = @transform_1, window_bounds = array<i64: 128, 128>}, {pipeline_mode = #tpu.pipeline_mode<synchronous>, transform_indices = @transform_2, window_bounds = array<i64: 128, 128>}, {pipeline_mode = #tpu.pipeline_mode<synchronous>, transform_indices = @transform_3, window_bounds = array<i64: 1, 128>}, {}, {pipeline_mode = #tpu.pipeline_mode<synchronous>, transform_indices = @transform_5, window_bounds = array<i64: 128, 128>}, {pipeline_mode = #tpu.pipeline_mode<synchronous>, transform_indices = @transform_6, window_bounds = array<i64: 1, 128>}, {pipeline_mode = #tpu.pipeline_mode<synchronous>, transform_indices = @transform_7, window_bounds = array<i64: 128, 128>}]} {
    tpu.enqueue_dma source(%arg5 : memref<128x128xbf16, #tpu.memory_space<any>>) target(%arg9 : memref<128x128xbf16, #tpu.memory_space<vmem>>) target_semaphore(%arg11 : memref<!tpu.dma_semaphore, #tpu.memory_space<semaphore_mem>>)
    %c0 = arith.constant 0 : index
    %c0_0 = arith.constant 0 : index
    %0 = vector.load %arg2[%c0, %c0_0] : memref<128x128xf32, #tpu.memory_space<vmem>>, vector<128x128xf32>
    %c0_1 = arith.constant 0 : index
    %c0_2 = arith.constant 0 : index
    %1 = vector.load %arg3[%c0_1, %c0_2] : memref<128x128xf32, #tpu.memory_space<vmem>>, vector<128x128xf32>
    %cst = arith.constant dense<0.000000e+00> : vector<128x128xf32>
    %2 = tpu.matmul %0, %1, %cst {dimension_numbers = #tpu.dot_dimension_numbers<[1], [0], [0], [1], [0, 0, 1, 1], [], []>} : vector<128x128xf32>, vector<128x128xf32>, vector<128x128xf32> -> vector<128x128xf32>
    %c0_3 = arith.constant 0 : index
    %c0_4 = arith.constant 0 : index
    %3 = vector.load %arg4[%c0_3, %c0_4] : memref<1x128xf32, #tpu.memory_space<vmem>>, vector<1x128xf32>
    %4 = vector.broadcast %3 : vector<1x128xf32> to vector<128x128xf32>
    %5 = arith.addf %2, %4 : vector<128x128xf32>
    %cst_5 = arith.constant 0.000000e+00 : f32
    %6 = vector.broadcast %cst_5 : f32 to vector<128x128xf32>
    %7 = arith.maximumf %5, %6 : vector<128x128xf32>
    %8 = tpu.iota {dimensions = array<i32: 0>} : vector<128x128xi32>
    %c64_i32 = arith.constant 64 : i32
    %9 = vector.broadcast %c64_i32 : i32 to vector<128x128xi32>
    %10 = arith.cmpi slt, %8, %9 : vector<128x128xi32>
    %cst_6 = arith.constant 0.000000e+00 : f32
    %11 = vector.broadcast %cst_6 : f32 to vector<128x128xf32>
    %12 = arith.select %10, %7, %11 : vector<128x128xi1>, vector<128x128xf32>
    %13 = arith.truncf %12 : vector<128x128xf32> to vector<128x128xbf16>
    %c0_7 = arith.constant 0 : index
    %c0_8 = arith.constant 0 : index
    %14 = vector.load %arg10[%c0_7, %c0_8] : memref<128x128xbf16, #tpu.memory_space<vmem>>, vector<128x128xbf16>
    tpu.vector_store %arg10[%c0_7, %c0_8], %13 {strides = array<i32>} : memref<128x128xbf16, #tpu.memory_space<vmem>>, vector<128x128xbf16>,
    tpu.wait_dma2 semaphore(%arg11 : memref<!tpu.dma_semaphore, #tpu.memory_space<semaphore_mem>>) src(%arg5 : memref<128x128xbf16, #tpu.memory_space<any>>) dst(%arg9 : memref<128x128xbf16, #tpu.memory_space<vmem>>)
    %c0_9 = arith.constant 0 : index
    %c0_10 = arith.constant 0 : index
    %15 = vector.load %arg10[%c0_9, %c0_10] : memref<128x128xbf16, #tpu.memory_space<vmem>>, vector<128x128xbf16>
    %16 = arith.extf %15 : vector<128x128xbf16> to vector<128x128xf32>
    %c0_11 = arith.constant 0 : index
    %c0_12 = arith.constant 0 : index
    %17 = vector.load %arg9[%c0_11, %c0_12] : memref<128x128xbf16, #tpu.memory_space<vmem>>, vector<128x128xbf16>
    %cst_13 = arith.constant dense<0.000000e+00> : vector<128x128xf32>
    %18 = tpu.matmul %17, %15, %cst_13 {dimension_numbers = #tpu.dot_dimension_numbers<[1], [0], [0], [1], [0, 0, 1, 1], [], []>} : vector<128x128xbf16>, vector<128x128xbf16>, vector<128x128xf32> -> vector<128x128xf32>
    %c0_14 = arith.constant 0 : index
    %c0_15 = arith.constant 0 : index
    %19 = memref.load %arg1[%c0_14, %c0_15] : memref<2x5xf32, #tpu.memory_space<smem>>
    %20 = vector.broadcast %19 : f32 to vector<128x128xf32>
    %21 = arith.mulf %20, %16 : vector<128x128xf32>
    %c0_16 = arith.constant 0 : index
    %c1 = arith.constant 1 : index
    %22 = memref.load %arg1[%c0_16, %c1] : memref<2x5xf32, #tpu.memory_space<smem>>
    %23 = vector.broadcast %22 : f32 to vector<128x128xf32>
    %24 = arith.mulf %23, %18 : vector<128x128xf32>
    %25 = arith.addf %21, %24 : vector<128x128xf32>
    %26 = arith.truncf %18 : vector<128x128xf32> to vector<128x128xbf16>
    %c0_17 = arith.constant 0 : index
    %c0_18 = arith.constant 0 : index
    %27 = vector.load %arg9[%c0_17, %c0_18] : memref<128x128xbf16, #tpu.memory_space<vmem>>, vector<128x128xbf16>
    %cst_19 = arith.constant dense<0.000000e+00> : vector<128x128xf32>
    %28 = tpu.matmul %27, %26, %cst_19 {dimension_numbers = #tpu.dot_dimension_numbers<[1], [0], [0], [1], [0, 0, 1, 1], [], []>} : vector<128x128xbf16>, vector<128x128xbf16>, vector<128x128xf32> -> vector<128x128xf32>
    %cst_20 = arith.constant 2.000000e+00 : f32
    %29 = vector.broadcast %cst_20 : f32 to vector<128x128xf32>
    %30 = arith.mulf %29, %28 : vector<128x128xf32>
    %31 = arith.subf %30, %16 : vector<128x128xf32>
    %c0_21 = arith.constant 0 : index
    %c2 = arith.constant 2 : index
    %32 = memref.load %arg1[%c0_21, %c2] : memref<2x5xf32, #tpu.memory_space<smem>>
    %33 = vector.broadcast %32 : f32 to vector<128x128xf32>
    %34 = arith.mulf %33, %31 : vector<128x128xf32>
    %35 = arith.addf %25, %34 : vector<128x128xf32>
    %36 = arith.truncf %31 : vector<128x128xf32> to vector<128x128xbf16>
    %c0_22 = arith.constant 0 : index
    %c0_23 = arith.constant 0 : index
    %37 = vector.load %arg9[%c0_22, %c0_23] : memref<128x128xbf16, #tpu.memory_space<vmem>>, vector<128x128xbf16>
    %cst_24 = arith.constant dense<0.000000e+00> : vector<128x128xf32>
    %38 = tpu.matmul %37, %36, %cst_24 {dimension_numbers = #tpu.dot_dimension_numbers<[1], [0], [0], [1], [0, 0, 1, 1], [], []>} : vector<128x128xbf16>, vector<128x128xbf16>, vector<128x128xf32> -> vector<128x128xf32>
    %cst_25 = arith.constant 2.000000e+00 : f32
    %39 = vector.broadcast %cst_25 : f32 to vector<128x128xf32>
    %40 = arith.mulf %39, %38 : vector<128x128xf32>
    %41 = arith.subf %40, %18 : vector<128x128xf32>
    %c0_26 = arith.constant 0 : index
    %c3 = arith.constant 3 : index
    %42 = memref.load %arg1[%c0_26, %c3] : memref<2x5xf32, #tpu.memory_space<smem>>
    %43 = vector.broadcast %42 : f32 to vector<128x128xf32>
    %44 = arith.mulf %43, %41 : vector<128x128xf32>
    %45 = arith.addf %35, %44 : vector<128x128xf32>
    %46 = arith.truncf %41 : vector<128x128xf32> to vector<128x128xbf16>
    %c0_27 = arith.constant 0 : index
    %c0_28 = arith.constant 0 : index
    %47 = vector.load %arg9[%c0_27, %c0_28] : memref<128x128xbf16, #tpu.memory_space<vmem>>, vector<128x128xbf16>
    %cst_29 = arith.constant dense<0.000000e+00> : vector<128x128xf32>
    %48 = tpu.matmul %47, %46, %cst_29 {dimension_numbers = #tpu.dot_dimension_numbers<[1], [0], [0], [1], [0, 0, 1, 1], [], []>} : vector<128x128xbf16>, vector<128x128xbf16>, vector<128x128xf32> -> vector<128x128xf32>
    %cst_30 = arith.constant 2.000000e+00 : f32
    %49 = vector.broadcast %cst_30 : f32 to vector<128x128xf32>
    %50 = arith.mulf %49, %48 : vector<128x128xf32>
    %51 = arith.subf %50, %31 : vector<128x128xf32>
    %c0_31 = arith.constant 0 : index
    %c4 = arith.constant 4 : index
    %52 = memref.load %arg1[%c0_31, %c4] : memref<2x5xf32, #tpu.memory_space<smem>>
    %53 = vector.broadcast %52 : f32 to vector<128x128xf32>
    %54 = arith.mulf %53, %51 : vector<128x128xf32>
    %55 = arith.addf %45, %54 : vector<128x128xf32>
    %cst_32 = arith.constant 0.000000e+00 : f32
    %56 = vector.broadcast %cst_32 : f32 to vector<128x128xf32>
    %57 = arith.maximumf %55, %56 : vector<128x128xf32>
    %58 = arith.truncf %57 : vector<128x128xf32> to vector<128x128xbf16>
    %c0_33 = arith.constant 0 : index
    %c0_34 = arith.constant 0 : index
    %59 = vector.load %arg10[%c0_33, %c0_34] : memref<128x128xbf16, #tpu.memory_space<vmem>>, vector<128x128xbf16>
    tpu.vector_store %arg10[%c0_33, %c0_34], %58 {strides = array<i32>} : memref<128x128xbf16, #tpu.memory_space<vmem>>, vector<128x128xbf16>,
    %c0_35 = arith.constant 0 : index
    %c0_36 = arith.constant 0 : index
    %60 = vector.load %arg10[%c0_35, %c0_36] : memref<128x128xbf16, #tpu.memory_space<vmem>>, vector<128x128xbf16>
    %61 = arith.extf %60 : vector<128x128xbf16> to vector<128x128xf32>
    %c0_37 = arith.constant 0 : index
    %c0_38 = arith.constant 0 : index
    %62 = vector.load %arg9[%c0_37, %c0_38] : memref<128x128xbf16, #tpu.memory_space<vmem>>, vector<128x128xbf16>
    %cst_39 = arith.constant dense<0.000000e+00> : vector<128x128xf32>
    %63 = tpu.matmul %62, %60, %cst_39 {dimension_numbers = #tpu.dot_dimension_numbers<[1], [0], [0], [1], [0, 0, 1, 1], [], []>} : vector<128x128xbf16>, vector<128x128xbf16>, vector<128x128xf32> -> vector<128x128xf32>
    %c1_40 = arith.constant 1 : index
    %c0_41 = arith.constant 0 : index
    %64 = memref.load %arg1[%c1_40, %c0_41] : memref<2x5xf32, #tpu.memory_space<smem>>
    %65 = vector.broadcast %64 : f32 to vector<128x128xf32>
    %66 = arith.mulf %65, %61 : vector<128x128xf32>
    %c1_42 = arith.constant 1 : index
    %c1_43 = arith.constant 1 : index
    %67 = memref.load %arg1[%c1_42, %c1_43] : memref<2x5xf32, #tpu.memory_space<smem>>
    %68 = vector.broadcast %67 : f32 to vector<128x128xf32>
    %69 = arith.mulf %68, %63 : vector<128x128xf32>
    %70 = arith.addf %66, %69 : vector<128x128xf32>
    %71 = arith.truncf %63 : vector<128x128xf32> to vector<128x128xbf16>
    %c0_44 = arith.constant 0 : index
    %c0_45 = arith.constant 0 : index
    %72 = vector.load %arg9[%c0_44, %c0_45] : memref<128x128xbf16, #tpu.memory_space<vmem>>, vector<128x128xbf16>
    %cst_46 = arith.constant dense<0.000000e+00> : vector<128x128xf32>
    %73 = tpu.matmul %72, %71, %cst_46 {dimension_numbers = #tpu.dot_dimension_numbers<[1], [0], [0], [1], [0, 0, 1, 1], [], []>} : vector<128x128xbf16>, vector<128x128xbf16>, vector<128x128xf32> -> vector<128x128xf32>
    %cst_47 = arith.constant 2.000000e+00 : f32
    %74 = vector.broadcast %cst_47 : f32 to vector<128x128xf32>
    %75 = arith.mulf %74, %73 : vector<128x128xf32>
    %76 = arith.subf %75, %61 : vector<128x128xf32>
    %c1_48 = arith.constant 1 : index
    %c2_49 = arith.constant 2 : index
    %77 = memref.load %arg1[%c1_48, %c2_49] : memref<2x5xf32, #tpu.memory_space<smem>>
    %78 = vector.broadcast %77 : f32 to vector<128x128xf32>
    %79 = arith.mulf %78, %76 : vector<128x128xf32>
    %80 = arith.addf %70, %79 : vector<128x128xf32>
    %81 = arith.truncf %76 : vector<128x128xf32> to vector<128x128xbf16>
    %c0_50 = arith.constant 0 : index
    %c0_51 = arith.constant 0 : index
    %82 = vector.load %arg9[%c0_50, %c0_51] : memref<128x128xbf16, #tpu.memory_space<vmem>>, vector<128x128xbf16>
    %cst_52 = arith.constant dense<0.000000e+00> : vector<128x128xf32>
    %83 = tpu.matmul %82, %81, %cst_52 {dimension_numbers = #tpu.dot_dimension_numbers<[1], [0], [0], [1], [0, 0, 1, 1], [], []>} : vector<128x128xbf16>, vector<128x128xbf16>, vector<128x128xf32> -> vector<128x128xf32>
    %cst_53 = arith.constant 2.000000e+00 : f32
    %84 = vector.broadcast %cst_53 : f32 to vector<128x128xf32>
    %85 = arith.mulf %84, %83 : vector<128x128xf32>
    %86 = arith.subf %85, %63 : vector<128x128xf32>
    %c1_54 = arith.constant 1 : index
    %c3_55 = arith.constant 3 : index
    %87 = memref.load %arg1[%c1_54, %c3_55] : memref<2x5xf32, #tpu.memory_space<smem>>
    %88 = vector.broadcast %87 : f32 to vector<128x128xf32>
    %89 = arith.mulf %88, %86 : vector<128x128xf32>
    %90 = arith.addf %80, %89 : vector<128x128xf32>
    %91 = arith.truncf %86 : vector<128x128xf32> to vector<128x128xbf16>
    %c0_56 = arith.constant 0 : index
    %c0_57 = arith.constant 0 : index
    %92 = vector.load %arg9[%c0_56, %c0_57] : memref<128x128xbf16, #tpu.memory_space<vmem>>, vector<128x128xbf16>
    %cst_58 = arith.constant dense<0.000000e+00> : vector<128x128xf32>
    %93 = tpu.matmul %92, %91, %cst_58 {dimension_numbers = #tpu.dot_dimension_numbers<[1], [0], [0], [1], [0, 0, 1, 1], [], []>} : vector<128x128xbf16>, vector<128x128xbf16>, vector<128x128xf32> -> vector<128x128xf32>
    %cst_59 = arith.constant 2.000000e+00 : f32
    %94 = vector.broadcast %cst_59 : f32 to vector<128x128xf32>
    %95 = arith.mulf %94, %93 : vector<128x128xf32>
    %96 = arith.subf %95, %76 : vector<128x128xf32>
    %c1_60 = arith.constant 1 : index
    %c4_61 = arith.constant 4 : index
    %97 = memref.load %arg1[%c1_60, %c4_61] : memref<2x5xf32, #tpu.memory_space<smem>>
    %98 = vector.broadcast %97 : f32 to vector<128x128xf32>
    %99 = arith.mulf %98, %96 : vector<128x128xf32>
    %100 = arith.addf %90, %99 : vector<128x128xf32>
    %cst_62 = arith.constant 0.000000e+00 : f32
    %101 = vector.broadcast %cst_62 : f32 to vector<128x128xf32>
    %102 = arith.maximumf %100, %101 : vector<128x128xf32>
    %103 = arith.truncf %102 : vector<128x128xf32> to vector<128x128xbf16>
    %c0_63 = arith.constant 0 : index
    %c0_64 = arith.constant 0 : index
    %104 = vector.load %arg10[%c0_63, %c0_64] : memref<128x128xbf16, #tpu.memory_space<vmem>>, vector<128x128xbf16>
    tpu.vector_store %arg10[%c0_63, %c0_64], %103 {strides = array<i32>} : memref<128x128xbf16, #tpu.memory_space<vmem>>, vector<128x128xbf16>,
    %c0_65 = arith.constant 0 : index
    %c0_66 = arith.constant 0 : index
    %105 = vector.load %arg10[%c0_65, %c0_66] : memref<128x128xbf16, #tpu.memory_space<vmem>>, vector<128x128xbf16>
    %106 = arith.extf %105 : vector<128x128xbf16> to vector<128x128xf32>
    %c0_67 = arith.constant 0 : index
    %c0_68 = arith.constant 0 : index
    %107 = vector.load %arg6[%c0_67, %c0_68] : memref<128x128xf32, #tpu.memory_space<vmem>>, vector<128x128xf32>
    %cst_69 = arith.constant dense<0.000000e+00> : vector<128x128xf32>
    %108 = tpu.matmul %106, %107, %cst_69 {dimension_numbers = #tpu.dot_dimension_numbers<[1], [0], [0], [1], [0, 0, 1, 1], [], []>} : vector<128x128xf32>, vector<128x128xf32>, vector<128x128xf32> -> vector<128x128xf32>
    %c0_70 = arith.constant 0 : index
    %c0_71 = arith.constant 0 : index
    %109 = vector.load %arg7[%c0_70, %c0_71] : memref<1x128xf32, #tpu.memory_space<vmem>>, vector<1x128xf32>
    %110 = vector.broadcast %109 : vector<1x128xf32> to vector<128x128xf32>
    %111 = arith.addf %108, %110 : vector<128x128xf32>
    %c0_72 = arith.constant 0 : index
    %c0_73 = arith.constant 0 : index
    %112 = vector.load %arg8[%c0_72, %c0_73] : memref<128x128xf32, #tpu.memory_space<vmem>>, vector<128x128xf32>
    tpu.vector_store %arg8[%c0_72, %c0_73], %111 {strides = array<i32>} : memref<128x128xf32, #tpu.memory_space<vmem>>, vector<128x128xf32>,
    return
  }
  func.func @transform_0(%arg0: i32) -> (i32, i32) {
    %c0_i32 = arith.constant 0 : i32
    %c0_i32_0 = arith.constant 0 : i32
    %c0_i32_1 = arith.constant 0 : i32
    return %c0_i32, %c0_i32_0 : i32, i32
  }
  func.func @transform_1(%arg0: i32) -> (i32, i32) {
    %c0_i32 = arith.constant 0 : i32
    %c0_i32_0 = arith.constant 0 : i32
    %c0_i32_1 = arith.constant 0 : i32
    return %c0_i32, %c0_i32_0 : i32, i32
  }
  func.func @transform_2(%arg0: i32) -> (i32, i32) {
    %c0_i32 = arith.constant 0 : i32
    %c0_i32_0 = arith.constant 0 : i32
    %c0_i32_1 = arith.constant 0 : i32
    return %c0_i32, %c0_i32_0 : i32, i32
  }
  func.func @transform_3(%arg0: i32) -> (i32, i32) {
    %c0_i32 = arith.constant 0 : i32
    %c0_i32_0 = arith.constant 0 : i32
    %c0_i32_1 = arith.constant 0 : i32
    return %c0_i32, %c0_i32_0 : i32, i32
  }
  func.func @transform_5(%arg0: i32) -> (i32, i32) {
    %c0_i32 = arith.constant 0 : i32
    %c0_i32_0 = arith.constant 0 : i32
    %c0_i32_1 = arith.constant 0 : i32
    return %c0_i32, %c0_i32_0 : i32, i32
  }
  func.func @transform_6(%arg0: i32) -> (i32, i32) {
    %c0_i32 = arith.constant 0 : i32
    %c0_i32_0 = arith.constant 0 : i32
    %c0_i32_1 = arith.constant 0 : i32
    return %c0_i32, %c0_i32_0 : i32, i32
  }
  func.func @transform_7(%arg0: i32) -> (i32, i32) {
    %c0_i32 = arith.constant 0 : i32
    %c0_i32_0 = arith.constant 0 : i32
    %c0_i32_1 = arith.constant 0 : i32
    return %c0_i32, %c0_i32_0 : i32, i32
  }
}

</mosaic_0001>

<bundles_post_ra>
// kernel: tpu_custom_call.1
= control target key start
LH: loop header
LB: loop body
LE: loop exit
PB: predicated region body
PF: predicated region fallthrough
CT: control target
= control target key end

     0   :  { %12 = vsyncpa [#allocation8], 0  ;;  %s3340_s0 = inlined_call_operand.hbm [shape: f32[2,5], index: 0, kind: input, shape index: {}]   ;;  %s3341_s1 = inlined_call_operand.hbm [shape: f32[128,128], index: 1, kind: input, shape index: {}]   ;;  %s3342_s2 = inlined_call_operand.hbm [shape: f32[128,128], index: 2, kind: input, shape index: {}]   ;;  %s3343_s3 = inlined_call_operand.vmem [shape: f32[1,128], index: 3, kind: input, shape index: {}]   ;;  %s3344_s4 = inlined_call_operand.hbm [shape: bf16[128,128], index: 4, kind: input, shape index: {}]   ;;  %s3345_s5 = inlined_call_operand.hbm [shape: f32[128,128], index: 5, kind: input, shape index: {}]   ;;  %s3346_s6 = inlined_call_operand.vmem [shape: f32[1,128], index: 6, kind: input, shape index: {}]   ;;  %s3347_s7 = inlined_call_operand.hbm [shape: f32[128,128], index: 7, kind: output, shape index: {}]  }
   0x1   :  { %13 = vsyncpa [#allocation6], 0 }
   0x2   :  { %14 = vsyncpa [#allocation11], 0 }
   0x3   :  { %15 = vsyncpa [#allocation7], 0  ;;  %s42_s26 = sshll.u32 %s3342_s2, 4  ;;  %s2311_s27 = smov [#allocation10]   ;;  %s43_s26 = int_to_ptr.hbm [resolvable:$true] %s42_s26 }
   0x4   :  { %s44_s28 = sshll.u32 %s2311_s27, 4  ;;  %s21_s8 = sshll.u32 %s3340_s0, 4  ;;  %s45_s28 = int_to_ptr.vmem [resolvable:$true] %s44_s28  ;;  %s22_s8 = int_to_ptr.hbm [resolvable:$true] %s21_s8 }
   0x5   :  { %s2312_s9 = smov 128   ;;  %s2313_s10 = smov 8  }
   0x6   :  { %50 = dma.hbm_to_vmem [thread:$0]  %s43_s26, 2048, %s45_s28, [#allocation11], %s2312_s9, %s2312_s9, %s2313_s10  }
   0x7   :  { %s2314_s11 = smov [#allocation5]   ;;  %s29_s2 = sshll.u32 %s3341_s1, 4  ;;  %s30_s2 = int_to_ptr.hbm [resolvable:$true] %s29_s2 }
   0x8   :  { %24 = dma.hbm_to_smem %s22_s8, 32, %s2314_s11, [#allocation8]  }
   0x9   :  { %s2315_s14 = smov [#allocation9]   ;;  %s57_s0 = sshll.u32 %s3345_s5, 4  ;;  %s58_s0 = int_to_ptr.hbm [resolvable:$true] %s57_s0 }
   0xa   :  { %s31_s15 = sshll.u32 %s2315_s14, 4  ;;  %s2316_s18 = smov [#allocation12]   ;;  %s32_s15 = int_to_ptr.vmem [resolvable:$true] %s31_s15 }
   0xb   :  { %37 = dma.hbm_to_vmem [thread:$0]  %s30_s2, 2048, %s32_s15, [#allocation6], %s2312_s9, %s2312_s9, %s2313_s10  }
   0xc   :  { %s59_s19 = sshll.u32 %s2316_s18, 4  ;;  %s60_s19 = int_to_ptr.vmem [resolvable:$true] %s59_s19 }
   0xd   :  { %65 = dma.hbm_to_vmem [thread:$0]  %s58_s0, 2048, %s60_s19, [#allocation11], %s2312_s9, %s2312_s9, %s2313_s10  }
   0xe   :  { %2301 = dma.done.wait [#allocation8], 32  }
   0xf   :  { %2302 = vsyncadd [#allocation8], 4294967264 }
  0x10   :  { %2303 = dma.done.wait [#allocation6], 2048  }
  0x11   :  { %2304 = vsyncadd [#allocation6], 4294965248 }
  0x12   :  { %2305 = dma.done.wait [#allocation11], 4096  }
  0x13   :  { %2306 = vsyncadd [#allocation11], 4294963200 }
  0x14   :  { %84 = sfence }
  0x15   :  { %v129_v0 = vld [vmem:[#allocation10 + $0x78] sm:$0xff]  ;;  %v128_v1 = vld [vmem:[#allocation10 + $0x70] sm:$0xff]  ;;  %v127_v2 = vld [vmem:[#allocation10 + $0x68] sm:$0xff]  ;;  %s92_s20 = sshll.u32 %s3344_s4, 4  ;;  %s2317_s21 = smov [#allocation2]   ;;  %v2318_v49 = vmov 0.0|0.0   ;;  %s93_s20 = int_to_ptr.hbm [resolvable:$true] %s92_s20 }
  0x16   :  { %134 = vmatpush.msra.mxu0 %v129_v0  ;;  %2134 = vmatpush.msra.mxu2 %v129_v0  ;;  %v126_v3 = vld [vmem:[#allocation10 + $0x60] sm:$0xff]  ;;  %v125_v4 = vld [vmem:[#allocation10 + $0x58] sm:$0xff]  ;;  %v124_v5 = vld [vmem:[#allocation10 + $0x50] sm:$0xff]  ;;  %s94_s22 = sshll.u32 %s2317_s21, 4  ;;  %v1975_v50 = vunpack.c.l.bf16 %v2318_v49  ;;  %s95_s22 = int_to_ptr.vmem [resolvable:$true] %s94_s22 }
  0x17   :  { %v123_v6 = vld [vmem:[#allocation10 + $0x48] sm:$0xff]  ;;  %v122_v7 = vld [vmem:[#allocation10 + $0x40] sm:$0xff]  ;;  %v121_v8 = vld [vmem:[#allocation10 + $0x38] sm:$0xff]  ;;  %97 = dma.hbm_to_vmem [thread:$0]  %s93_s20, 1024, %s95_s22, [#allocation4] }
  0x18   :  { %135 = vmatpush.msra.mxu0 %v128_v1  ;;  %2135 = vmatpush.msra.mxu2 %v128_v1  ;;  %v120_v9 = vld [vmem:[#allocation10 + $0x30] sm:$0xff]  ;;  %v119_v10 = vld [vmem:[#allocation10 + $0x28] sm:$0xff]  ;;  %v118_v11 = vld [vmem:[#allocation10 + $0x20] sm:$0xff]  ;;  %v1977_v52 = vpack.c.bf16 %v1975_v50, %v1975_v50 }
  0x19   :  { %v117_v12 = vld [vmem:[#allocation10 + $0x18] sm:$0xff]  ;;  %v116_v13 = vld [vmem:[#allocation10 + $0x10] sm:$0xff]  ;;  %v115_v14 = vld [vmem:[#allocation10 + $0x8] sm:$0xff] }
  0x1a   :  { %136 = vmatpush.msra.mxu0 %v127_v2  ;;  %2136 = vmatpush.msra.mxu2 %v127_v2  ;;  %v114_v15 = vld [vmem:[#allocation10] sm:$0xff]  ;;  %v99_v18 = vld [vmem:[#allocation9 + $0x8] sm:$0xff]  ;;  %v100_v20 = vld [vmem:[#allocation9 + $0x10] sm:$0xff]  ;;  %2109 = vst [vmem:[#allocation3 + $0x20] sm:$0xff] %v1977_v52  }
  0x1b   :  { %v98_v16 = vld [vmem:[#allocation9] sm:$0xff]  ;;  %v107_v19 = vld [vmem:[#allocation9 + $0x48] sm:$0xff]  ;;  %v108_v21 = vld [vmem:[#allocation9 + $0x50] sm:$0xff]  ;;  %2110 = vst [vmem:[#allocation3 + $0x28] sm:$0xff] %v1977_v52  }
  0x1c   :  { %137 = vmatpush.msra.mxu0 %v126_v3  ;;  %2137 = vmatpush.msra.mxu2 %v126_v3  ;;  %v106_v17 = vld [vmem:[#allocation9 + $0x40] sm:$0xff]  ;;  %v101_v22 = vld [vmem:[#allocation9 + $0x18] sm:$0xff]  ;;  %v103_v26 = vld [vmem:[#allocation9 + $0x28] sm:$0xff]  ;;  %2111 = vst [vmem:[#allocation3 + $0x30] sm:$0xff] %v1977_v52  }
  0x1d   :  { %v109_v23 = vld [vmem:[#allocation9 + $0x58] sm:$0xff]  ;;  %v102_v24 = vld [vmem:[#allocation9 + $0x20] sm:$0xff]  ;;  %v111_v27 = vld [vmem:[#allocation9 + $0x68] sm:$0xff]  ;;  %2112 = vst [vmem:[#allocation3 + $0x38] sm:$0xff] %v1977_v52  }
  0x1e   :  { %138 = vmatpush.msra.mxu0 %v125_v4  ;;  %2138 = vmatpush.msra.mxu2 %v125_v4  ;;  %v110_v25 = vld [vmem:[#allocation9 + $0x60] sm:$0xff]  ;;  %v104_v28 = vld [vmem:[#allocation9 + $0x30] sm:$0xff]  ;;  %v105_v30 = vld [vmem:[#allocation9 + $0x38] sm:$0xff] }
  0x1f   :  { %v112_v29 = vld [vmem:[#allocation9 + $0x70] sm:$0xff]  ;;  %v113_v31 = vld [vmem:[#allocation9 + $0x78] sm:$0xff]  ;;  %v2167_v33 = vld [vmem:[%s3343_s3] ss:$0 sm:$0xff] }
  0x20   :  { %139 = vmatpush.msra.mxu0 %v124_v5  ;;  %2139 = vmatpush.msra.mxu2 %v124_v5 }
  0x22   :  { %140 = vmatpush.msra.mxu0 %v123_v6  ;;  %2140 = vmatpush.msra.mxu2 %v123_v6 }
  0x24   :  { %141 = vmatpush.msra.mxu0 %v122_v7  ;;  %2141 = vmatpush.msra.mxu2 %v122_v7 }
  0x26   :  { %142 = vmatpush.msra.mxu0 %v121_v8  ;;  %2142 = vmatpush.msra.mxu2 %v121_v8 }
  0x28   :  { %143 = vmatpush.msra.mxu0 %v120_v9  ;;  %2143 = vmatpush.msra.mxu2 %v120_v9 }
  0x2a   :  { %144 = vmatpush.msra.mxu0 %v119_v10  ;;  %2144 = vmatpush.msra.mxu2 %v119_v10 }
  0x2c   :  { %145 = vmatpush.msra.mxu0 %v118_v11  ;;  %2145 = vmatpush.msra.mxu2 %v118_v11 }
  0x2e   :  { %146 = vmatpush.msra.mxu0 %v117_v12  ;;  %2146 = vmatpush.msra.mxu2 %v117_v12 }
  0x30   :  { %147 = vmatpush.msra.mxu0 %v116_v13  ;;  %2147 = vmatpush.msra.mxu2 %v116_v13 }
  0x32   :  { %148 = vmatpush.msra.mxu0 %v115_v14  ;;  %2148 = vmatpush.msra.mxu2 %v115_v14 }
  0x34   :  { %149 = vmatpush.msra.mxu0 %v114_v15  ;;  %2149 = vmatpush.msra.mxu2 %v114_v15 }
  0x35   :  { %150 = vmatmul.f32.vlgmr.msra.gmra.mxu0 %v98_v16  ;;  %174 = vmatmul.f32.vlgmr.msra.gmra.mxu2 %v106_v17 }
  0x3d   :  { %153 = vmatmul.f32.gmra.mxu0 %v99_v18  ;;  %177 = vmatmul.f32.gmra.mxu2 %v107_v19 }
  0x45   :  { %156 = vmatmul.f32.gmra.mxu0 %v100_v20  ;;  %180 = vmatmul.f32.gmra.mxu2 %v108_v21 }
  0x4d   :  { %159 = vmatmul.f32.gmra.mxu0 %v101_v22  ;;  %183 = vmatmul.f32.gmra.mxu2 %v109_v23 }
  0x55   :  { %162 = vmatmul.f32.gmra.mxu0 %v102_v24  ;;  %186 = vmatmul.f32.gmra.mxu2 %v110_v25 }
  0x5d   :  { %165 = vmatmul.f32.gmra.mxu0 %v103_v26  ;;  %189 = vmatmul.f32.gmra.mxu2 %v111_v27 }
  0x65   :  { %168 = vmatmul.f32.gmra.mxu0 %v104_v28  ;;  %192 = vmatmul.f32.gmra.mxu2 %v112_v29 }
  0x6d   :  { %171 = vmatmul.f32.gmra.mxu0 %v105_v30  ;;  %195 = vmatmul.f32.gmra.mxu2 %v113_v31 }
  0xb2   :  { %v151_v32 = vpop.f32.mrf.mxu0 }
  0xb3   :  { %v152_v35 = vadd.f32 %v2167_v33, %v151_v32 }
  0xb5   :  { %v199_v38 = vmax.f32 %v152_v35, 0.0 }
  0xb8   :  { %v175_v34 = vpop.f32.mrf.mxu2 }
  0xba   :  { %v154_v36 = vpop.f32.mrf.mxu0 }
  0xbb   :  { %v155_v37 = vadd.f32 %v2167_v33, %v154_v36 }
  0xbd   :  { %v200_v39 = vmax.f32 %v155_v37, 0.0 }
  0xbf   :  { %v1957_v40 = vpack.c.bf16 %v200_v39, %v199_v38 }
  0xc0   :  { %v178_v41 = vpop.f32.mrf.mxu2 }
  0xc1   :  { %1958 = vst [vmem:[#allocation3] sm:$0xff] %v1957_v40  }
  0xc2   :  { %v157_v42 = vpop.f32.mrf.mxu0 }
  0xc3   :  { %v158_v44 = vadd.f32 %v2167_v33, %v157_v42 }
  0xc5   :  { %v201_v47 = vmax.f32 %v158_v44, 0.0 }
  0xc8   :  { %v181_v43 = vpop.f32.mrf.mxu2 }
  0xca   :  { %v160_v45 = vpop.f32.mrf.mxu0 }
  0xcb   :  { %v161_v46 = vadd.f32 %v2167_v33, %v160_v45 }
  0xcd   :  { %v202_v48 = vmax.f32 %v161_v46, 0.0 }
  0xcf   :  { %v1962_v51 = vpack.c.bf16 %v202_v48, %v201_v47 }
  0xd0   :  { %v184_v53 = vpop.f32.mrf.mxu2 }
  0xd1   :  { %2106 = vst [vmem:[#allocation3 + $0x8] sm:$0xff] %v1962_v51  }
  0xd2   :  { %v163_v54 = vpop.f32.mrf.mxu0 }
  0xd3   :  { %v164_v56 = vadd.f32 %v2167_v33, %v163_v54 }
  0xd5   :  { %v203_v59 = vmax.f32 %v164_v56, 0.0 }
  0xd8   :  { %v187_v55 = vpop.f32.mrf.mxu2 }
  0xda   :  { %v166_v57 = vpop.f32.mrf.mxu0 }
  0xdb   :  { %v167_v58 = vadd.f32 %v2167_v33, %v166_v57 }
  0xdd   :  { %v204_v60 = vmax.f32 %v167_v58, 0.0 }
  0xdf   :  { %v1967_v61 = vpack.c.bf16 %v204_v60, %v203_v59 }
  0xe0   :  { %v190_v62 = vpop.f32.mrf.mxu2 }
  0xe1   :  { %2107 = vst [vmem:[#allocation3 + $0x10] sm:$0xff] %v1967_v61  }
  0xe2   :  { %v169_v63 = vpop.f32.mrf.mxu0 }
  0xe3   :  { %v170_v1 = vadd.f32 %v2167_v33, %v169_v63 }
  0xe5   :  { %v205_v4 = vmax.f32 %v170_v1, 0.0 }
  0xe8   :  { %v193_v0 = vpop.f32.mrf.mxu2 }
  0xea   :  { %v172_v2 = vpop.f32.mrf.mxu0 }
  0xeb   :  { %v173_v3 = vadd.f32 %v2167_v33, %v172_v2 }
  0xed   :  { %v206_v5 = vmax.f32 %v173_v3, 0.0 }
  0xef   :  { %v1972_v6 = vpack.c.bf16 %v206_v5, %v205_v4 }
  0xf0   :  { %v196_v7 = vpop.f32.mrf.mxu2 }
  0xf1   :  { %2108 = vst [vmem:[#allocation3 + $0x18] sm:$0xff] %v1972_v6  }
  0xf2   :  { %2307 = dma.done.wait [#allocation4], 1024 }
  0xf3   :  { %2308 = vsyncadd [#allocation4], 4294966272  ;;  %v1929_v8 = vld [vmem:[#allocation3 + $0x38] sm:$0xff]  ;;  %v1928_v9 = vld [vmem:[#allocation3 + $0x30] sm:$0xff]  ;;  %s493_s3 = sld [smem:[#allocation5]]  ;;  %s1763_s16 = sshll.u32 %s3347_s7, 4  ;;  %s1764_s16 = int_to_ptr.hbm [resolvable:$true] %s1763_s16 }
  0xf4   :  { %2150 = vmatpush.bf16.msra.mxu3 %v1929_v8  ;;  %444 = vmatpush.bf16.msra.mxu1 %v1929_v8  ;;  %v1927_v10 = vld [vmem:[#allocation3 + $0x28] sm:$0xff]  ;;  %v1926_v11 = vld [vmem:[#allocation3 + $0x20] sm:$0xff]  ;;  %v1924_v13 = vld [vmem:[#allocation3 + $0x10] sm:$0xff]  ;;  %s1848_s4 = sld [smem:[#allocation5 + $0x1]] }
  0xf5   :  { %v1923_v14 = vld [vmem:[#allocation3 + $0x8] sm:$0xff]  ;;  %v1922_v15 = vld [vmem:[#allocation3] sm:$0xff]  ;;  %v2399_v20 = vld [vmem:[#allocation2 + $0x30] sm:$0xff]  ;;  %s1849_s25 = sld [smem:[#allocation5 + $0x2]] }
  0xf6   :  { %v2387_v16 = vld [vmem:[#allocation2 + $0x20] sm:$0xff]  ;;  %v2393_v18 = vld [vmem:[#allocation2 + $0x28] sm:$0xff]  ;;  %v2401_v21 = vld [vmem:[#allocation2 + $0x10] sm:$0xff]  ;;  %s1850_s26 = sld [smem:[#allocation5 + $0x3]] }
  0xf7   :  { %v2389_v17 = vld [vmem:[#allocation2] sm:$0xff]  ;;  %v2395_v19 = vld [vmem:[#allocation2 + $0x8] sm:$0xff]  ;;  %v2405_v22 = vld [vmem:[#allocation2 + $0x38] sm:$0xff]  ;;  %s1851_s27 = sld [smem:[#allocation5 + $0x4]] }
  0xf8   :  { %2151 = vmatpush.bf16.msra.mxu3 %v1928_v9  ;;  %445 = vmatpush.bf16.msra.mxu1 %v1928_v9  ;;  %v1925_v12 = vld [vmem:[#allocation3 + $0x18] sm:$0xff]  ;;  %v2411_v24 = vld [vmem:[#allocation3 + $0x20] sm:$0xff]   ;;  %v2435_v36 = vld [vmem:[#allocation3 + $0x28] sm:$0xff]   ;;  %s1917_s28 = sld [smem:[#allocation5 + $0x81]] }
  0xf9   :  { %v2407_v23 = vld [vmem:[#allocation2 + $0x18] sm:$0xff]  ;;  %v3348_v25 = vunpack.c.l.bf16 %v2411_v24  ;;  %v2414_v26 = vstv %s493_s3  ;;  %v3349_v33 = vunpack.c.h.bf16 %v2411_v24  ;;  %v3350_v40 = vunpack.c.l.bf16 %v2435_v36  ;;  %v2461_v49 = vld [vmem:[#allocation3 + $0x30] sm:$0xff]   ;;  %s1916_s29 = sld [smem:[#allocation5 + $0x80]] }
  0xfa   :  { %3427 = vst [vmem:[#allocation23_spill] sm:$0xff] %v2414_v26  ;;  %v2416_v27 = vstv %s1848_s4  ;;  %v3351_v45 = vunpack.c.h.bf16 %v2435_v36  ;;  %v3352_v52 = vunpack.c.l.bf16 %v2461_v49  ;;  %v329_v58 = vunpack.c.h.bf16 %v2461_v49  ;;  %v314_v62 = vld [vmem:[#allocation3 + $0x38] sm:$0xff]   ;;  %s1918_s30 = sld [smem:[#allocation5 + $0x82]] }
  0xfb   :  { %3428 = vst [vmem:[#allocation24_spill] sm:$0xff] %v2416_v27  ;;  %v503_v28 = vmul.f32 %v2414_v26, %v3348_v25  ;;  %v504_v34 = vmul.f32 %v2414_v26, %v3349_v33  ;;  %v505_v41 = vmul.f32 %v2414_v26, %v3350_v40  ;;  %v330_v1 = vunpack.c.l.bf16 %v314_v62  ;;  %s1919_s8 = sld [smem:[#allocation5 + $0x83]] }
  0xfc   :  { %2152 = vmatpush.bf16.msra.mxu3 %v1927_v10  ;;  %446 = vmatpush.bf16.msra.mxu1 %v1927_v10  ;;  %v506_v47 = vmul.f32 %v2414_v26, %v3351_v45  ;;  %v507_v54 = vmul.f32 %v2414_v26, %v3352_v52  ;;  %v508_v59 = vmul.f32 %v2414_v26, %v329_v58  ;;  %v331_v7 = vunpack.c.h.bf16 %v314_v62  ;;  %s1920_s11 = sld [smem:[#allocation5 + $0x84]] }
  0xfd   :  { %v509_v2 = vmul.f32 %v2414_v26, %v330_v1 }
  0xfe   :  { %v510_v8 = vmul.f32 %v2414_v26, %v331_v7 }
 0x100   :  { %2153 = vmatpush.bf16.msra.mxu3 %v1926_v11  ;;  %447 = vmatpush.bf16.msra.mxu1 %v1926_v11 }
 0x104   :  { %2154 = vmatpush.bf16.msra.mxu3 %v1925_v12  ;;  %448 = vmatpush.bf16.msra.mxu1 %v1925_v12 }
 0x108   :  { %2155 = vmatpush.bf16.msra.mxu3 %v1924_v13  ;;  %449 = vmatpush.bf16.msra.mxu1 %v1924_v13 }
 0x10c   :  { %2156 = vmatpush.bf16.msra.mxu3 %v1923_v14  ;;  %450 = vmatpush.bf16.msra.mxu1 %v1923_v14 }
 0x110   :  { %2157 = vmatpush.bf16.msra.mxu3 %v1922_v15  ;;  %451 = vmatpush.bf16.msra.mxu1 %v1922_v15 }
 0x113   :  { %472 = vmatmul.bf16.vlgmr.msra.gmra.mxu3 %v2387_v16  ;;  %452 = vmatmul.bf16.vlgmr.msra.gmra.mxu1 %v2389_v17 }
 0x123   :  { %477 = vmatmul.bf16.gmra.mxu3 %v2393_v18  ;;  %457 = vmatmul.bf16.gmra.mxu1 %v2395_v19 }
 0x133   :  { %482 = vmatmul.bf16.gmra.mxu3 %v2399_v20  ;;  %462 = vmatmul.bf16.gmra.mxu1 %v2401_v21 }
 0x143   :  { %487 = vmatmul.bf16.gmra.mxu3 %v2405_v22  ;;  %467 = vmatmul.bf16.gmra.mxu1 %v2407_v23 }
 0x190   :  { %v2423_v30 = vpop.f32.mrf.mxu1 }
 0x191   :  { %3429 = vst [vmem:[#allocation25_spill] sm:$0xff] %v2423_v30 }
 0x196   :  { %v2421_v29 = vpop.f32.mrf.mxu3 }
 0x197   :  { %v521_v31 = vmul.f32 %v2416_v27, %v2421_v29 }
 0x198   :  { %v2439_v38 = vpop.f32.mrf.mxu1 }
 0x199   :  { %v2427_v32 = vadd.f32 %v521_v31, %v503_v28 }
 0x19e   :  { %v2433_v35 = vpop.f32.mrf.mxu3 }
 0x19f   :  { %v522_v37 = vmul.f32 %v2416_v27, %v2433_v35  ;;  %v549_v28 = vpack.c.bf16 %v2433_v35, %v2421_v29 }
 0x1a0   :  { %v2454_v46 = vpop.f32.mrf.mxu1 }
 0x1a1   :  { %v2441_v39 = vadd.f32 %v522_v37, %v504_v34 }
 0x1a6   :  { %v2447_v42 = vpop.f32.mrf.mxu3 }
 0x1a7   :  { %v523_v43 = vmul.f32 %v2416_v27, %v2447_v42 }
 0x1a8   :  { %v2468_v53 = vpop.f32.mrf.mxu1 }
 0x1a9   :  { %v2451_v44 = vadd.f32 %v523_v43, %v505_v41  ;;  %v546_v41 = vpack.c.bf16 %v2468_v53, %v2454_v46  ;;  %v545_v43 = vpack.c.bf16 %v2439_v38, %v2423_v30  ;;  %v3431_v30 = vunpack.c.l.bf16 %v2461_v49 }
 0x1ae   :  { %v2459_v48 = vpop.f32.mrf.mxu3 }
 0x1af   :  { %v524_v50 = vmul.f32 %v2416_v27, %v2459_v48  ;;  %v550_v15 = vpack.c.bf16 %v2459_v48, %v2447_v42 }
 0x1b0   :  { %v2483_v60 = vpop.f32.mrf.mxu1 }
 0x1b1   :  { %v2465_v51 = vadd.f32 %v524_v50, %v506_v47 }
 0x1b6   :  { %v2473_v55 = vpop.f32.mrf.mxu3 }
 0x1b7   :  { %v525_v56 = vmul.f32 %v2416_v27, %v2473_v55 }
 0x1b8   :  { %v2496_v5 = vpop.f32.mrf.mxu1 }
 0x1b9   :  { %v2477_v57 = vadd.f32 %v525_v56, %v507_v54  ;;  %v547_v37 = vpack.c.bf16 %v2496_v5, %v2483_v60 }
 0x1be   :  { %v2485_v61 = vpop.f32.mrf.mxu3 }
 0x1bf   :  { %v526_v63 = vmul.f32 %v2416_v27, %v2485_v61  ;;  %v551_v14 = vpack.c.bf16 %v2485_v61, %v2473_v55 }
 0x1c0   :  { %v2509_v13 = vpop.f32.mrf.mxu1 }
 0x1c1   :  { %v2489_v0 = vadd.f32 %v526_v63, %v508_v59 }
 0x1c6   :  { %v2492_v3 = vpop.f32.mrf.mxu3 }
 0x1c7   :  { %v527_v4 = vmul.f32 %v2416_v27, %v2492_v3 }
 0x1c8   :  { %v2517_v31 = vpop.f32.mrf.mxu1 }
 0x1c9   :  { %v2498_v6 = vadd.f32 %v527_v4, %v509_v2  ;;  %v548_v34 = vpack.c.bf16 %v2517_v31, %v2509_v13 }
 0x1ce   :  { %v2501_v9 = vpop.f32.mrf.mxu3 }
 0x1cf   :  { %v528_v10 = vmul.f32 %v2416_v27, %v2501_v9  ;;  %v552_v11 = vpack.c.bf16 %v2501_v9, %v2492_v3 }
 0x1d1   :  { %553 = vmatpush.bf16.msrb.mxu2 %v552_v11  ;;  %v2507_v12 = vadd.f32 %v528_v10, %v510_v8 }
 0x1d5   :  { %554 = vmatpush.bf16.msrb.mxu2 %v551_v14 }
 0x1d9   :  { %555 = vmatpush.bf16.msrb.mxu2 %v550_v15 }
 0x1dd   :  { %556 = vmatpush.bf16.msrb.mxu2 %v549_v28 }
 0x1e1   :  { %557 = vmatpush.bf16.msrb.mxu2 %v548_v34 }
 0x1e5   :  { %558 = vmatpush.bf16.msrb.mxu2 %v547_v37 }
 0x1e9   :  { %559 = vmatpush.bf16.msrb.mxu2 %v546_v41 }
 0x1ed   :  { %560 = vmatpush.bf16.msrb.mxu2 %v545_v43 }
 0x1f0   :  { %561 = vmatmul.bf16.vlgmr.msrb.gmra.mxu2 %v2389_v17 }
 0x200   :  { %566 = vmatmul.bf16.gmra.mxu2 %v2395_v19 }
 0x210   :  { %571 = vmatmul.bf16.gmra.mxu2 %v2401_v21 }
 0x220   :  { %576 = vmatmul.bf16.gmra.mxu2 %v2407_v23 }
 0x230   :  { %581 = vmatmul.bf16.gmra.mxu2 %v2387_v16 }
 0x240   :  { %586 = vmatmul.bf16.gmra.mxu2 %v2393_v18 }
 0x250   :  { %591 = vmatmul.bf16.gmra.mxu2 %v2399_v20 }
 0x260   :  { %596 = vmatmul.bf16.gmra.mxu2 %v2405_v22 }
 0x273   :  { %v2535_v47 = vpop.f32.mrf.mxu2 }
 0x27b   :  { %v564_v50 = vpop.f32.mrf.mxu2 }
 0x283   :  { %v567_v54 = vpop.f32.mrf.mxu2 }
 0x28b   :  { %v569_v56 = vpop.f32.mrf.mxu2 }
 0x293   :  { %v572_v59 = vpop.f32.mrf.mxu2 }
 0x29b   :  { %v574_v62 = vpop.f32.mrf.mxu2 }
 0x2a3   :  { %v577_v63 = vpop.f32.mrf.mxu2 }
 0x2ab   :  { %v579_v2 = vpop.f32.mrf.mxu2 }
 0x2ac   :  { %v609_v49 = vmul.f32 2.0, %v579_v2 }
 0x2b3   :  { %v582_v4 = vpop.f32.mrf.mxu2 }
 0x2bb   :  { %v584_v8 = vpop.f32.mrf.mxu2 }
 0x2c3   :  { %v587_v10 = vpop.f32.mrf.mxu2 }
 0x2c4   :  { %v612_v27 = vmul.f32 2.0, %v587_v10  ;;  %v2561_v10 = vld [vmem:[#allocation3 + $0x18] sm:$0xff]  }
 0x2c5   :  { %3434 = vst [vmem:[#allocation27_spill] sm:$0xff] %v2561_v10  ;;  %v3360_v2 = vunpack.c.l.bf16 %v2561_v10 }
 0x2cb   :  { %v589_v11 = vpop.f32.mrf.mxu2 }
 0x2cc   :  { %v613_v45 = vmul.f32 2.0, %v589_v11  ;;  %v610_v11 = vmul.f32 2.0, %v582_v4  ;;  %v3436_v4 = vunpack.c.l.bf16 %v2411_v24 }
 0x2d3   :  { %v592_v14 = vpop.f32.mrf.mxu2 }
 0x2d4   :  { %v614_v25 = vmul.f32 2.0, %v592_v14 }
 0x2db   :  { %v594_v15 = vpop.f32.mrf.mxu2 }
 0x2dc   :  { %v615_v41 = vmul.f32 2.0, %v594_v15  ;;  %v611_v15 = vmul.f32 2.0, %v584_v8  ;;  %v3359_v8 = vunpack.c.h.bf16 %v2561_v10 }
 0x2de   :  { %v2543_v52 = vsub.f32 %v615_v41, %v329_v58  ;;  %v3433_v58 = vunpack.c.l.bf16 %v2435_v36  ;;  %v2579_v41 = vsub.f32 %v609_v49, %v3359_v8 }
 0x2e0   :  { %3439 = vst [vmem:[#allocation30_spill] sm:$0xff] %v2579_v41 }
 0x2e3   :  { %v597_v28 = vpop.f32.mrf.mxu2 }
 0x2e4   :  { %v616_v34 = vmul.f32 2.0, %v597_v28  ;;  %v2549_v28 = vsub.f32 %v614_v25, %v3431_v30  ;;  %v3435_v25 = vunpack.c.h.bf16 %v2411_v24 }
 0x2e6   :  { %v2537_v33 = vsub.f32 %v616_v34, %v330_v1  ;;  %v3432_v1 = vunpack.c.h.bf16 %v2435_v36  ;;  %v2559_v34 = vsub.f32 %v612_v27, %v3433_v58  ;;  %v2574_v27 = vld [vmem:[#allocation3 + $0x10] sm:$0xff]   ;;  %v607_v36 = vmul.f32 2.0, %v574_v62 }
 0x2e7   :  { %3438 = vst [vmem:[#allocation29_spill] sm:$0xff] %v2574_v27  ;;  %v605_v62 = vmul.f32 2.0, %v569_v56  ;;  %v603_v56 = vmul.f32 2.0, %v564_v50 }
 0x2e8   :  { %3430 = vst [vmem:[#allocation26_spill] sm:$0xff] %v2537_v33  ;;  %v2553_v14 = vsub.f32 %v613_v45, %v3432_v1  ;;  %v608_v45 = vmul.f32 2.0, %v577_v63  ;;  %v606_v63 = vmul.f32 2.0, %v572_v59  ;;  %v2588_v1 = vld [vmem:[#allocation3 + $0x8] sm:$0xff]   ;;  %v604_v59 = vmul.f32 2.0, %v567_v54 }
 0x2e9   :  { %v3363_v49 = vunpack.c.h.bf16 %v2588_v1  ;;  %v602_v54 = vmul.f32 2.0, %v2535_v47 }
 0x2ea   :  { %v673_v30 = vpack.c.bf16 %v2553_v14, %v2559_v34  ;;  %v2586_v24 = vsub.f32 %v608_v45, %v3360_v2  ;;  %v3364_v45 = vunpack.c.l.bf16 %v2588_v1 }
 0x2eb   :  { %v599_v37 = vpop.f32.mrf.mxu2 }
 0x2ec   :  { %v617_v43 = vmul.f32 2.0, %v599_v37  ;;  %v2572_v37 = vsub.f32 %v610_v11, %v3436_v4  ;;  %3440 = vst [vmem:[#allocation31_spill] sm:$0xff] %v2586_v24  ;;  %v671_v58 = vpack.c.bf16 %v2579_v41, %v2586_v24  ;;  %v2607_v4 = vsub.f32 %v605_v62, %v3363_v49 }
 0x2ed   :  { %v2661_v41 = vstv %s1850_s26 }
 0x2ee   :  { %v2539_v40 = vsub.f32 %v617_v43, %v331_v7  ;;  %v674_v7 = vpack.c.bf16 %v2543_v52, %v2549_v28  ;;  %3437 = vst [vmem:[#allocation28_spill] sm:$0xff] %v2572_v37 }
 0x2ef   :  { %3443 = vst [vmem:[#allocation34_spill] sm:$0xff] %v2607_v4 }
 0x2f0   :  { %v675_v26 = vpack.c.bf16 %v2539_v40, %v2537_v33 }
 0x2f2   :  { %676 = vmatpush.bf16.msrb.mxu3 %v675_v26  ;;  %v2565_v26 = vsub.f32 %v611_v15, %v3435_v25  ;;  %v3361_v15 = vunpack.c.h.bf16 %v2574_v27 }
 0x2f4   :  { %v672_v43 = vpack.c.bf16 %v2565_v26, %v2572_v37  ;;  %v2593_v11 = vsub.f32 %v607_v36, %v3361_v15 }
 0x2f6   :  { %677 = vmatpush.bf16.msrb.mxu3 %v674_v7  ;;  %v3362_v7 = vunpack.c.l.bf16 %v2574_v27  ;;  %3441 = vst [vmem:[#allocation32_spill] sm:$0xff] %v2593_v11 }
 0x2f8   :  { %v2600_v25 = vsub.f32 %v606_v63, %v3362_v7  ;;  %v2615_v63 = vsub.f32 %v604_v59, %v3364_v45  ;;  %v2654_v7 = vstv %s1849_s25 }
 0x2f9   :  { %v644_v45 = vmul.f32 %v2654_v7, %v2572_v37  ;;  %v645_v27 = vmul.f32 %v2654_v7, %v2565_v26 }
 0x2fa   :  { %678 = vmatpush.bf16.msrb.mxu3 %v673_v30  ;;  %3442 = vst [vmem:[#allocation33_spill] sm:$0xff] %v2600_v25  ;;  %v2602_v30 = vld [vmem:[#allocation3] sm:$0xff]   ;;  %v670_v36 = vpack.c.bf16 %v2593_v11, %v2600_v25  ;;  %v669_v62 = vpack.c.bf16 %v2607_v4, %v2615_v63 }
 0x2fb   :  { %3444 = vst [vmem:[#allocation35_spill] sm:$0xff] %v2615_v63  ;;  %v3366_v50 = vunpack.c.l.bf16 %v2602_v30  ;;  %v660_v24 = vadd.f32 %v644_v45, %v2427_v32  ;;  %v646_v32 = vmul.f32 %v2654_v7, %v2559_v34 }
 0x2fd   :  { %v2626_v8 = vsub.f32 %v602_v54, %v3366_v50 }
 0x2fe   :  { %679 = vmatpush.bf16.msrb.mxu3 %v672_v43  ;;  %v3365_v43 = vunpack.c.h.bf16 %v2602_v30 }
 0x302   :  { %680 = vmatpush.bf16.msrb.mxu3 %v671_v58  ;;  %v2620_v58 = vsub.f32 %v603_v56, %v3365_v43 }
 0x304   :  { %v668_v47 = vpack.c.bf16 %v2620_v58, %v2626_v8 }
 0x306   :  { %681 = vmatpush.bf16.msrb.mxu3 %v670_v36 }
 0x30a   :  { %682 = vmatpush.bf16.msrb.mxu3 %v669_v62 }
 0x30e   :  { %683 = vmatpush.bf16.msrb.mxu3 %v668_v47 }
 0x311   :  { %684 = vmatmul.bf16.vlgmr.msrb.gmra.mxu3 %v2389_v17 }
 0x321   :  { %689 = vmatmul.bf16.gmra.mxu3 %v2395_v19 }
 0x331   :  { %694 = vmatmul.bf16.gmra.mxu3 %v2401_v21 }
 0x341   :  { %699 = vmatmul.bf16.gmra.mxu3 %v2407_v23 }
 0x351   :  { %704 = vmatmul.bf16.gmra.mxu3 %v2387_v16 }
 0x361   :  { %709 = vmatmul.bf16.gmra.mxu3 %v2393_v18 }
 0x371   :  { %714 = vmatmul.bf16.gmra.mxu3 %v2399_v20 }
 0x381   :  { %719 = vmatmul.bf16.gmra.mxu3 %v2405_v22 }
 0x394   :  { %v2638_v59 = vpop.f32.mrf.mxu3 }
 0x39c   :  { %v2640_v56 = vpop.f32.mrf.mxu3 }
 0x3a4   :  { %v2642_v36 = vpop.f32.mrf.mxu3 }
 0x3ac   :  { %v2644_v54 = vpop.f32.mrf.mxu3 }
 0x3b4   :  { %v2646_v62 = vpop.f32.mrf.mxu3 }
 0x3bc   :  { %v2648_v47 = vpop.f32.mrf.mxu3 }
 0x3c4   :  { %v2650_v2 = vpop.f32.mrf.mxu3 }
 0x3cc   :  { %v2652_v15 = vpop.f32.mrf.mxu3 }
 0x3d4   :  { %v705_v49 = vpop.f32.mrf.mxu3 }
 0x3d5   :  { %v733_v43 = vmul.f32 2.0, %v705_v49  ;;  %v661_v49 = vadd.f32 %v645_v27, %v2441_v39  ;;  %v647_v39 = vmul.f32 %v2654_v7, %v2553_v14 }
 0x3d7   :  { %v2659_v50 = vsub.f32 %v733_v43, %v2421_v29 }
 0x3d9   :  { %v767_v10 = vmul.f32 %v2661_v41, %v2659_v50 }
 0x3db   :  { %v2666_v11 = vadd.f32 %v767_v10, %v660_v24  ;;  %v662_v24 = vadd.f32 %v646_v32, %v2451_v44  ;;  %v648_v44 = vmul.f32 %v2654_v7, %v2549_v28 }
 0x3dc   :  { %v707_v25 = vpop.f32.mrf.mxu3 }
 0x3dd   :  { %3445 = vst [vmem:[#allocation36_spill] sm:$0xff] %v2666_v11  ;;  %v734_v4 = vmul.f32 2.0, %v707_v25 }
 0x3df   :  { %v750_v37 = vsub.f32 %v734_v4, %v2433_v35 }
 0x3e1   :  { %v768_v29 = vmul.f32 %v2661_v41, %v750_v37 }
 0x3e3   :  { %v2673_v43 = vadd.f32 %v768_v29, %v661_v49  ;;  %v663_v49 = vadd.f32 %v647_v39, %v2465_v51  ;;  %v649_v51 = vmul.f32 %v2654_v7, %v2543_v52 }
 0x3e4   :  { %v710_v63 = vpop.f32.mrf.mxu3 }
 0x3e5   :  { %v735_v45 = vmul.f32 2.0, %v710_v63 }
 0x3e7   :  { %v751_v10 = vsub.f32 %v735_v45, %v2447_v42  ;;  %v664_v45 = vadd.f32 %v648_v44, %v2477_v57  ;;  %v650_v57 = vmul.f32 %v2654_v7, %v2537_v33 }
 0x3e9   :  { %v769_v11 = vmul.f32 %v2661_v41, %v751_v10 }
 0x3eb   :  { %v2680_v25 = vadd.f32 %v769_v11, %v662_v24 }
 0x3ec   :  { %v712_v35 = vpop.f32.mrf.mxu3 }
 0x3ed   :  { %v736_v27 = vmul.f32 2.0, %v712_v35 }
 0x3ef   :  { %v752_v4 = vsub.f32 %v736_v27, %v2459_v48 }
 0x3f1   :  { %v770_v29 = vmul.f32 %v2661_v41, %v752_v4 }
 0x3f3   :  { %v2687_v63 = vadd.f32 %v770_v29, %v663_v49  ;;  %v665_v49 = vadd.f32 %v649_v51, %v2489_v0  ;;  %v651_v0 = vmul.f32 %v2654_v7, %v2539_v40 }
 0x3f4   :  { %v715_v42 = vpop.f32.mrf.mxu3 }
 0x3f5   :  { %v737_v32 = vmul.f32 2.0, %v715_v42 }
 0x3f7   :  { %v753_v11 = vsub.f32 %v737_v32, %v2473_v55 }
 0x3f9   :  { %v771_v24 = vmul.f32 %v2661_v41, %v753_v11 }
 0x3fb   :  { %v2694_v35 = vadd.f32 %v771_v24, %v664_v45  ;;  %v666_v45 = vadd.f32 %v650_v57, %v2498_v6  ;;  %v732_v6 = vmul.f32 2.0, %v2652_v15  ;;  %v796_v57 = vpack.c.bf16 %v752_v4, %v751_v10 }
 0x3fc   :  { %v717_v48 = vpop.f32.mrf.mxu3 }
 0x3fd   :  { %v738_v39 = vmul.f32 2.0, %v717_v48 }
 0x3ff   :  { %v754_v27 = vsub.f32 %v738_v39, %v2485_v61 }
 0x401   :  { %v772_v29 = vmul.f32 %v2661_v41, %v754_v27 }
 0x403   :  { %v2701_v42 = vadd.f32 %v772_v29, %v665_v49  ;;  %v667_v49 = vadd.f32 %v651_v0, %v2507_v12  ;;  %v2722_v12 = vsub.f32 %v732_v6, %v2517_v31 }
 0x404   :  { %v720_v55 = vpop.f32.mrf.mxu3 }
 0x405   :  { %v739_v44 = vmul.f32 2.0, %v720_v55 }
 0x407   :  { %v755_v32 = vsub.f32 %v739_v44, %v2492_v3  ;;  %v797_v3 = vpack.c.bf16 %v754_v27, %v753_v11  ;;  %v731_v44 = vmul.f32 2.0, %v2650_v2  ;;  %v728_v11 = vmul.f32 2.0, %v2644_v54 }
 0x408   :  { %v725_v54 = vmul.f32 2.0, %v2638_v59 }
 0x409   :  { %v773_v24 = vmul.f32 %v2661_v41, %v755_v32  ;;  %v744_v10 = vsub.f32 %v728_v11, %v2468_v53 }
 0x40b   :  { %v2708_v48 = vadd.f32 %v773_v24, %v666_v45  ;;  %v730_v45 = vmul.f32 2.0, %v2648_v47  ;;  %v2726_v24 = vsub.f32 %v731_v44, %v2509_v13  ;;  %v727_v47 = vmul.f32 2.0, %v2642_v36  ;;  %v3446_v36 = vld [vmem:[#allocation25_spill] sm:$0xff] }
 0x40c   :  { %v722_v61 = vpop.f32.mrf.mxu3  ;;  %v741_v0 = vsub.f32 %v725_v54, %v3446_v36 }
 0x40d   :  { %v740_v51 = vmul.f32 2.0, %v722_v61  ;;  %v794_v15 = vpack.c.bf16 %v2722_v12, %v2726_v24  ;;  %v2732_v2 = vsub.f32 %v730_v45, %v2496_v5  ;;  %v743_v4 = vsub.f32 %v727_v47, %v2454_v46 }
 0x40e   :  { %v759_v6 = vmul.f32 %v2661_v41, %v741_v0 }
 0x40f   :  { %v756_v39 = vsub.f32 %v740_v51, %v2501_v9  ;;  %v795_v9 = vpack.c.bf16 %v750_v37, %v2659_v50  ;;  %v726_v50 = vmul.f32 2.0, %v2640_v56  ;;  %v792_v27 = vpack.c.bf16 %v744_v10, %v743_v4 }
 0x411   :  { %v774_v29 = vmul.f32 %v2661_v41, %v756_v39  ;;  %v798_v55 = vpack.c.bf16 %v756_v39, %v755_v32  ;;  %v729_v32 = vmul.f32 2.0, %v2646_v62  ;;  %v742_v61 = vsub.f32 %v726_v50, %v2439_v38  ;;  %v3447_v39 = vld [vmem:[#allocation24_spill] sm:$0xff] }
 0x413   :  { %v2715_v33 = vadd.f32 %v774_v29, %v667_v49  ;;  %799 = vmatpush.bf16.msrb.mxu0 %v798_v55  ;;  %v2736_v37 = vsub.f32 %v729_v32, %v2483_v60  ;;  %v791_v51 = vpack.c.bf16 %v742_v61, %v741_v0  ;;  %v3449_v49 = vld [vmem:[#allocation23_spill] sm:$0xff]  ;;  %v2767_v29 = vstv %s1851_s27 }
 0x415   :  { %v793_v62 = vpack.c.bf16 %v2732_v2, %v2736_v37 }
 0x417   :  { %800 = vmatpush.bf16.msrb.mxu0 %v797_v3  ;;  %v637_v3 = vmul.f32 %v2654_v7, %v2620_v58 }
 0x41b   :  { %801 = vmatpush.bf16.msrb.mxu0 %v796_v57 }
 0x41f   :  { %802 = vmatpush.bf16.msrb.mxu0 %v795_v9 }
 0x423   :  { %803 = vmatpush.bf16.msrb.mxu0 %v794_v15 }
 0x427   :  { %804 = vmatpush.bf16.msrb.mxu0 %v793_v62 }
 0x42b   :  { %805 = vmatpush.bf16.msrb.mxu0 %v792_v27 }
 0x42f   :  { %806 = vmatpush.bf16.msrb.mxu0 %v791_v51  ;;  %v515_v51 = vmul.f32 %v3447_v39, %v2454_v46  ;;  %v3454_v46 = vld [vmem:[#allocation34_spill] sm:$0xff] }
 0x432   :  { %807 = vmatmul.bf16.vlgmr.msrb.gmra.mxu0 %v2389_v17  ;;  %v513_v17 = vmul.f32 %v3447_v39, %v3446_v36 }
 0x442   :  { %812 = vmatmul.bf16.gmra.mxu0 %v2395_v19  ;;  %v3448_v19 = vunpack.c.l.bf16 %v2602_v30 }
 0x452   :  { %817 = vmatmul.bf16.gmra.mxu0 %v2401_v21  ;;  %v495_v21 = vmul.f32 %v3449_v49, %v3448_v19 }
 0x454   :  { %v529_v55 = vadd.f32 %v513_v17, %v495_v21  ;;  %v3452_v17 = vunpack.c.h.bf16 %v2588_v1  ;;  %v3453_v21 = vld [vmem:[#allocation35_spill] sm:$0xff] }
 0x456   :  { %v498_v19 = vmul.f32 %v3449_v49, %v3452_v17 }
 0x462   :  { %822 = vmatmul.bf16.gmra.mxu0 %v2407_v23  ;;  %v514_v23 = vmul.f32 %v3447_v39, %v2439_v38 }
 0x472   :  { %827 = vmatmul.bf16.gmra.mxu0 %v2387_v16  ;;  %v3450_v16 = vunpack.c.h.bf16 %v2602_v30  ;;  %v760_v30 = vmul.f32 %v2661_v41, %v742_v61  ;;  %v3451_v61 = vunpack.c.l.bf16 %v2588_v1 }
 0x482   :  { %832 = vmatmul.bf16.gmra.mxu0 %v2393_v18  ;;  %v496_v18 = vmul.f32 %v3449_v49, %v3450_v16 }
 0x484   :  { %v530_v57 = vadd.f32 %v514_v23, %v496_v18  ;;  %v638_v23 = vmul.f32 %v2654_v7, %v3453_v21 }
 0x486   :  { %v653_v11 = vadd.f32 %v637_v3, %v530_v57 }
 0x488   :  { %v776_v15 = vadd.f32 %v760_v30, %v653_v11 }
 0x492   :  { %837 = vmatmul.bf16.gmra.mxu0 %v2399_v20  ;;  %v636_v20 = vmul.f32 %v2654_v7, %v2626_v8 }
 0x494   :  { %v652_v38 = vadd.f32 %v636_v20, %v529_v55  ;;  %v639_v20 = vmul.f32 %v2654_v7, %v3454_v46 }
 0x496   :  { %v775_v32 = vadd.f32 %v759_v6, %v652_v38 }
 0x4a2   :  { %842 = vmatmul.bf16.gmra.mxu0 %v2405_v22 }
 0x4af   :  { %v808_v59 = vpop.f32.mrf.mxu0 }
 0x4b0   :  { %v848_v56 = vmul.f32 2.0, %v808_v59  ;;  %v497_v59 = vmul.f32 %v3449_v49, %v3451_v61  ;;  %v3458_v61 = vld [vmem:[#allocation33_spill] sm:$0xff] }
 0x4b2   :  { %v864_v22 = vsub.f32 %v848_v56, %v2626_v8  ;;  %v531_v18 = vadd.f32 %v515_v51, %v497_v59  ;;  %v640_v59 = vmul.f32 %v2654_v7, %v3458_v61 }
 0x4b4   :  { %v882_v45 = vmul.f32 %v2767_v29, %v864_v22  ;;  %v761_v22 = vmul.f32 %v2661_v41, %v743_v4  ;;  %v654_v6 = vadd.f32 %v638_v23, %v531_v18 }
 0x4b6   :  { %v898_v47 = vadd.f32 %v882_v45, %v775_v32 }
 0x4b7   :  { %v810_v44 = vpop.f32.mrf.mxu0 }
 0x4b8   :  { %v849_v9 = vmul.f32 2.0, %v810_v44  ;;  %v914_v27 = vmax.f32 %v898_v47, 0.0  ;;  %v777_v44 = vadd.f32 %v761_v22, %v654_v6 }
 0x4ba   :  { %v865_v8 = vsub.f32 %v849_v9, %v2620_v58  ;;  %v516_v58 = vmul.f32 %v3447_v39, %v2468_v53  ;;  %v762_v53 = vmul.f32 %v2661_v41, %v744_v10  ;;  %v3455_v10 = vld [vmem:[#allocation29_spill] sm:$0xff] }
 0x4bc   :  { %v883_v50 = vmul.f32 %v2767_v29, %v865_v8  ;;  %v532_v55 = vadd.f32 %v516_v58, %v498_v19  ;;  %v763_v19 = vmul.f32 %v2661_v41, %v2736_v37 }
 0x4be   :  { %v899_v62 = vadd.f32 %v883_v50, %v776_v15  ;;  %v655_v38 = vadd.f32 %v639_v20, %v532_v55  ;;  %v517_v50 = vmul.f32 %v3447_v39, %v2483_v60  ;;  %v3459_v60 = vld [vmem:[#allocation32_spill] sm:$0xff] }
 0x4bf   :  { %v813_v54 = vpop.f32.mrf.mxu0  ;;  %v641_v17 = vmul.f32 %v2654_v7, %v3459_v60 }
 0x4c0   :  { %v915_v36 = vmax.f32 %v899_v62, 0.0  ;;  %v850_v0 = vmul.f32 2.0, %v813_v54  ;;  %v778_v45 = vadd.f32 %v762_v53, %v655_v38  ;;  %v3456_v62 = vunpack.c.l.bf16 %v3455_v10 }
 0x4c2   :  { %v1997_v56 = vpack.c.bf16 %v915_v36, %v914_v27  ;;  %v866_v16 = vsub.f32 %v850_v0, %v3453_v21  ;;  %v499_v54 = vmul.f32 %v3449_v49, %v3456_v62  ;;  %v518_v36 = vmul.f32 %v3447_v39, %v2496_v5 }
 0x4c3   :  { %v3457_v0 = vunpack.c.h.bf16 %v3455_v10 }
 0x4c4   :  { %1998 = vst [vmem:[#allocation3] sm:$0xff] %v1997_v56   ;;  %v884_v1 = vmul.f32 %v2767_v29, %v866_v16  ;;  %v533_v58 = vadd.f32 %v517_v50, %v499_v54  ;;  %v764_v16 = vmul.f32 %v2661_v41, %v2732_v2  ;;  %v3460_v2 = vld [vmem:[#allocation27_spill] sm:$0xff]  ;;  %v765_v54 = vmul.f32 %v2661_v41, %v2726_v24 }
 0x4c5   :  { %v500_v51 = vmul.f32 %v3449_v49, %v3457_v0 }
 0x4c6   :  { %v900_v9 = vadd.f32 %v884_v1, %v777_v44  ;;  %v656_v5 = vadd.f32 %v640_v59, %v533_v58 }
 0x4c7   :  { %v815_v3 = vpop.f32.mrf.mxu0  ;;  %v534_v21 = vadd.f32 %v518_v36, %v500_v51 }
 0x4c8   :  { %v851_v57 = vmul.f32 2.0, %v815_v3  ;;  %v916_v15 = vmax.f32 %v900_v9, 0.0  ;;  %v779_v20 = vadd.f32 %v763_v19, %v656_v5  ;;  %v3465_v5 = vld [vmem:[#allocation28_spill] sm:$0xff] }
 0x4c9   :  { %v657_v22 = vadd.f32 %v641_v17, %v534_v21 }
 0x4ca   :  { %v867_v30 = vsub.f32 %v851_v57, %v3454_v46 }
 0x4cb   :  { %v780_v3 = vadd.f32 %v764_v16, %v657_v22 }
 0x4cc   :  { %v885_v32 = vmul.f32 %v2767_v29, %v867_v30  ;;  %v519_v30 = vmul.f32 %v3447_v39, %v2509_v13  ;;  %v3464_v13 = vld [vmem:[#allocation30_spill] sm:$0xff] }
 0x4cd   :  { %v643_v62 = vmul.f32 %v2654_v7, %v3464_v13 }
 0x4ce   :  { %v901_v11 = vadd.f32 %v885_v32, %v778_v45  ;;  %v3461_v45 = vunpack.c.l.bf16 %v3460_v2 }
 0x4cf   :  { %v818_v8 = vpop.f32.mrf.mxu0 }
 0x4d0   :  { %v917_v4 = vmax.f32 %v901_v11, 0.0  ;;  %v852_v47 = vmul.f32 2.0, %v818_v8  ;;  %v501_v9 = vmul.f32 %v3449_v49, %v3461_v45  ;;  %v520_v11 = vmul.f32 %v3447_v39, %v2517_v31 }
 0x4d1   :  { %v3462_v8 = vunpack.c.h.bf16 %v3460_v2  ;;  %v766_v39 = vmul.f32 %v2661_v41, %v2722_v12 }
 0x4d2   :  { %v2002_v27 = vpack.c.bf16 %v917_v4, %v916_v15  ;;  %v868_v56 = vsub.f32 %v852_v47, %v3458_v61  ;;  %v3463_v4 = vld [vmem:[#allocation31_spill] sm:$0xff]  ;;  %v535_v10 = vadd.f32 %v519_v30, %v501_v9 }
 0x4d3   :  { %v502_v15 = vmul.f32 %v3449_v49, %v3462_v8  ;;  %v642_v47 = vmul.f32 %v2654_v7, %v3463_v4 }
 0x4d4   :  { %2113 = vst [vmem:[#allocation3 + $0x8] sm:$0xff] %v2002_v27   ;;  %v886_v18 = vmul.f32 %v2767_v29, %v868_v56 }
 0x4d5   :  { %v536_v27 = vadd.f32 %v520_v11, %v502_v15  ;;  %v658_v31 = vadd.f32 %v642_v47, %v535_v10 }
 0x4d6   :  { %v902_v6 = vadd.f32 %v886_v18, %v779_v20  ;;  %v3466_v20 = vld [vmem:[#allocation36_spill] sm:$0xff] }
 0x4d7   :  { %v820_v23 = vpop.f32.mrf.mxu0  ;;  %v781_v51 = vadd.f32 %v765_v54, %v658_v31  ;;  %v659_v61 = vadd.f32 %v643_v62, %v536_v27 }
 0x4d8   :  { %v853_v46 = vmul.f32 2.0, %v820_v23  ;;  %v918_v37 = vmax.f32 %v902_v6, 0.0 }
 0x4d9   :  { %v782_v56 = vadd.f32 %v766_v39, %v659_v61  ;;  %v3467_v39 = vld [vmem:[#allocation26_spill] sm:$0xff] }
 0x4da   :  { %v869_v55 = vsub.f32 %v853_v46, %v3459_v60 }
 0x4dc   :  { %v887_v53 = vmul.f32 %v2767_v29, %v869_v55 }
 0x4de   :  { %v903_v1 = vadd.f32 %v887_v53, %v780_v3 }
 0x4df   :  { %v823_v57 = vpop.f32.mrf.mxu0 }
 0x4e0   :  { %v919_v44 = vmax.f32 %v903_v1, 0.0  ;;  %v854_v38 = vmul.f32 2.0, %v823_v57 }
 0x4e2   :  { %v2007_v32 = vpack.c.bf16 %v919_v44, %v918_v37  ;;  %v870_v50 = vsub.f32 %v854_v38, %v3463_v4 }
 0x4e4   :  { %2114 = vst [vmem:[#allocation3 + $0x10] sm:$0xff] %v2007_v32   ;;  %v888_v49 = vmul.f32 %v2767_v29, %v870_v50 }
 0x4e6   :  { %v904_v58 = vadd.f32 %v888_v49, %v781_v51 }
 0x4e7   :  { %v825_v36 = vpop.f32.mrf.mxu0 }
 0x4e8   :  { %v855_v0 = vmul.f32 2.0, %v825_v36  ;;  %v920_v24 = vmax.f32 %v904_v58, 0.0 }
 0x4ea   :  { %v871_v59 = vsub.f32 %v855_v0, %v3464_v13 }
 0x4ec   :  { %v889_v7 = vmul.f32 %v2767_v29, %v871_v59 }
 0x4ee   :  { %v905_v60 = vadd.f32 %v889_v7, %v782_v56 }
 0x4ef   :  { %v828_v17 = vpop.f32.mrf.mxu0 }
 0x4f0   :  { %v921_v19 = vmax.f32 %v905_v60, 0.0  ;;  %v856_v21 = vmul.f32 2.0, %v828_v17 }
 0x4f2   :  { %v2012_v23 = vpack.c.bf16 %v921_v19, %v920_v24  ;;  %v872_v41 = vsub.f32 %v856_v21, %v3465_v5  ;;  %v2867_v21 = vld [vmem:[#allocation2 + $0x8] sm:$0xff]  ;;  %v2873_v5 = vld [vmem:[#allocation2 + $0x18] sm:$0xff] }
 0x4f4   :  { %2115 = vst [vmem:[#allocation3 + $0x18] sm:$0xff] %v2012_v23   ;;  %v890_v16 = vmul.f32 %v2767_v29, %v872_v41  ;;  %v2870_v23 = vld [vmem:[#allocation2 + $0x10] sm:$0xff]  ;;  %v2876_v41 = vld [vmem:[#allocation2 + $0x20] sm:$0xff] }
 0x4f6   :  { %v906_v22 = vadd.f32 %v890_v16, %v3466_v20  ;;  %v2882_v16 = vld [vmem:[#allocation2 + $0x30] sm:$0xff] }
 0x4f7   :  { %v830_v12 = vpop.f32.mrf.mxu0 }
 0x4f8   :  { %v857_v18 = vmul.f32 2.0, %v830_v12  ;;  %v922_v53 = vmax.f32 %v906_v22, 0.0  ;;  %v2879_v12 = vld [vmem:[#allocation2 + $0x28] sm:$0xff] }
 0x4fa   :  { %v873_v46 = vsub.f32 %v857_v18, %v2565_v26  ;;  %v2885_v18 = vld [vmem:[#allocation2 + $0x38] sm:$0xff] }
 0x4fb   :  { %v1941_v19 = vld [vmem:[#allocation3 + $0x18] sm:$0xff] }
 0x4fc   :  { %v891_v55 = vmul.f32 %v2767_v29, %v873_v46 }
 0x4fe   :  { %v907_v3 = vadd.f32 %v891_v55, %v2673_v43 }
 0x4ff   :  { %v833_v6 = vpop.f32.mrf.mxu0 }
 0x500   :  { %v923_v1 = vmax.f32 %v907_v3, 0.0  ;;  %v858_v57 = vmul.f32 2.0, %v833_v6 }
 0x502   :  { %v2017_v37 = vpack.c.bf16 %v923_v1, %v922_v53  ;;  %v874_v44 = vsub.f32 %v858_v57, %v2559_v34 }
 0x504   :  { %2116 = vst [vmem:[#allocation3 + $0x20] sm:$0xff] %v2017_v37   ;;  %v892_v30 = vmul.f32 %v2767_v29, %v874_v44 }
 0x506   :  { %v908_v45 = vadd.f32 %v892_v30, %v2680_v25 }
 0x507   :  { %v835_v38 = vpop.f32.mrf.mxu0 }
 0x508   :  { %v859_v2 = vmul.f32 2.0, %v835_v38  ;;  %v924_v11 = vmax.f32 %v908_v45, 0.0 }
 0x50a   :  { %v875_v26 = vsub.f32 %v859_v2, %v2553_v14 }
 0x50b   :  { %v1942_v24 = vld [vmem:[#allocation3 + $0x20] sm:$0xff] }
 0x50c   :  { %v893_v9 = vmul.f32 %v2767_v29, %v875_v26 }
 0x50e   :  { %v909_v43 = vadd.f32 %v893_v9, %v2687_v63 }
 0x50f   :  { %v838_v32 = vpop.f32.mrf.mxu0 }
 0x510   :  { %v925_v8 = vmax.f32 %v909_v43, 0.0  ;;  %v860_v15 = vmul.f32 2.0, %v838_v32 }
 0x512   :  { %v2022_v4 = vpack.c.bf16 %v925_v8, %v924_v11  ;;  %v876_v34 = vsub.f32 %v860_v15, %v2549_v28 }
 0x514   :  { %2117 = vst [vmem:[#allocation3 + $0x28] sm:$0xff] %v2022_v4   ;;  %v894_v50 = vmul.f32 %v2767_v29, %v876_v34 }
 0x516   :  { %v910_v25 = vadd.f32 %v894_v50, %v2694_v35 }
 0x517   :  { %v840_v47 = vpop.f32.mrf.mxu0 }
 0x518   :  { %v861_v10 = vmul.f32 2.0, %v840_v47  ;;  %v926_v54 = vmax.f32 %v910_v25, 0.0 }
 0x51a   :  { %v877_v14 = vsub.f32 %v861_v10, %v2543_v52 }
 0x51b   :  { %v1943_v17 = vld [vmem:[#allocation3 + $0x28] sm:$0xff] }
 0x51c   :  { %v895_v13 = vmul.f32 %v2767_v29, %v877_v14 }
 0x51e   :  { %v911_v63 = vadd.f32 %v895_v13, %v2701_v42 }
 0x51f   :  { %v843_v62 = vpop.f32.mrf.mxu0 }
 0x520   :  { %v927_v27 = vmax.f32 %v911_v63, 0.0  ;;  %v862_v36 = vmul.f32 2.0, %v843_v62 }
 0x522   :  { %v2027_v31 = vpack.c.bf16 %v927_v27, %v926_v54  ;;  %v878_v28 = vsub.f32 %v862_v36, %v3467_v39 }
 0x524   :  { %2118 = vst [vmem:[#allocation3 + $0x30] sm:$0xff] %v2027_v31   ;;  %v896_v0 = vmul.f32 %v2767_v29, %v878_v28 }
 0x526   :  { %v912_v35 = vadd.f32 %v896_v0, %v2708_v48  ;;  %v1939_v48 = vld [vmem:[#allocation3 + $0x8] sm:$0xff] }
 0x527   :  { %v845_v49 = vpop.f32.mrf.mxu0 }
 0x528   :  { %v863_v51 = vmul.f32 2.0, %v845_v49  ;;  %v928_v59 = vmax.f32 %v912_v35, 0.0 }
 0x52a   :  { %v879_v52 = vsub.f32 %v863_v51, %v2539_v40  ;;  %v1940_v40 = vld [vmem:[#allocation3 + $0x10] sm:$0xff] }
 0x52b   :  { %v1944_v60 = vld [vmem:[#allocation3 + $0x30] sm:$0xff] }
 0x52c   :  { %v897_v61 = vmul.f32 %v2767_v29, %v879_v52  ;;  %v1938_v29 = vld [vmem:[#allocation3] sm:$0xff]  ;;  %v2952_v52 = vld [vmem:[#allocation3 + $0x30] sm:$0xff]  }
 0x52d   :  { %3469 = vst [vmem:[#allocation24_spill] sm:$0xff] %v2952_v52 }
 0x52e   :  { %v913_v42 = vadd.f32 %v897_v61, %v2715_v33  ;;  %v2864_v33 = vld [vmem:[#allocation2] sm:$0xff] }
 0x530   :  { %v929_v56 = vmax.f32 %v913_v42, 0.0 }
 0x532   :  { %v2032_v58 = vpack.c.bf16 %v929_v56, %v928_v59 }
 0x534   :  { %2119 = vst [vmem:[#allocation3 + $0x38] sm:$0xff] %v2032_v58  }
 0x53b   :  { %v1945_v7 = vld [vmem:[#allocation3 + $0x38] sm:$0xff] }
 0x53c   :  { %1106 = vmatpush.bf16.msrb.mxu1 %v1945_v7  ;;  %v2950_v0 = vld [vmem:[#allocation3 + $0x38] sm:$0xff]   ;;  %v3387_v7 = vunpack.c.h.bf16 %v2952_v52 }
 0x53d   :  { %3468 = vst [vmem:[#allocation25_spill] sm:$0xff] %v2950_v0  ;;  %v3386_v42 = vunpack.c.l.bf16 %v2950_v0  ;;  %v3385_v59 = vunpack.c.h.bf16 %v2950_v0 }
 0x540   :  { %1107 = vmatpush.bf16.msrb.mxu1 %v1944_v60 }
 0x544   :  { %1108 = vmatpush.bf16.msrb.mxu1 %v1943_v17 }
 0x548   :  { %1109 = vmatpush.bf16.msrb.mxu1 %v1942_v24  ;;  %v2965_v24 = vld [vmem:[#allocation3 + $0x28] sm:$0xff]  }
 0x549   :  { %3472 = vst [vmem:[#allocation34_spill] sm:$0xff] %v2965_v24 }
 0x54c   :  { %1110 = vmatpush.bf16.msrb.mxu1 %v1941_v19 }
 0x550   :  { %1111 = vmatpush.bf16.msrb.mxu1 %v1940_v40  ;;  %v3388_v40 = vunpack.c.l.bf16 %v2952_v52 }
 0x554   :  { %1112 = vmatpush.bf16.msrb.mxu1 %v1939_v48 }
 0x558   :  { %1113 = vmatpush.bf16.msrb.mxu1 %v1938_v29 }
 0x55b   :  { %1114 = vmatmul.bf16.vlgmr.msrb.gmra.mxu1 %v2864_v33 }
 0x56b   :  { %1119 = vmatmul.bf16.gmra.mxu1 %v2867_v21 }
 0x57b   :  { %1124 = vmatmul.bf16.gmra.mxu1 %v2870_v23 }
 0x58b   :  { %1129 = vmatmul.bf16.gmra.mxu1 %v2873_v5 }
 0x59b   :  { %1134 = vmatmul.bf16.gmra.mxu1 %v2876_v41 }
 0x5ab   :  { %1139 = vmatmul.bf16.gmra.mxu1 %v2879_v12 }
 0x5bb   :  { %1144 = vmatmul.bf16.gmra.mxu1 %v2882_v16 }
 0x5cb   :  { %1149 = vmatmul.bf16.gmra.mxu1 %v2885_v18 }
 0x5d8   :  { %v2888_v46 = vpop.f32.mrf.mxu1 }
 0x5e0   :  { %v2890_v20 = vpop.f32.mrf.mxu1 }
 0x5e1   :  { %v1207_v34 = vpack.c.bf16 %v2890_v20, %v2888_v46 }
 0x5e8   :  { %v2892_v22 = vpop.f32.mrf.mxu1 }
 0x5f0   :  { %v2894_v55 = vpop.f32.mrf.mxu1 }
 0x5f1   :  { %v1208_v4 = vpack.c.bf16 %v2894_v55, %v2892_v22 }
 0x5f8   :  { %v2896_v3 = vpop.f32.mrf.mxu1 }
 0x600   :  { %v2898_v6 = vpop.f32.mrf.mxu1 }
 0x601   :  { %v1209_v15 = vpack.c.bf16 %v2898_v6, %v2896_v3 }
 0x608   :  { %v2900_v53 = vpop.f32.mrf.mxu1 }
 0x610   :  { %v2902_v1 = vpop.f32.mrf.mxu1 }
 0x611   :  { %v1210_v8 = vpack.c.bf16 %v2902_v1, %v2900_v53 }
 0x618   :  { %v2904_v57 = vpop.f32.mrf.mxu1 }
 0x620   :  { %v2906_v37 = vpop.f32.mrf.mxu1 }
 0x621   :  { %v1211_v11 = vpack.c.bf16 %v2906_v37, %v2904_v57 }
 0x628   :  { %v2908_v44 = vpop.f32.mrf.mxu1 }
 0x630   :  { %v2910_v38 = vpop.f32.mrf.mxu1 }
 0x631   :  { %v1212_v32 = vpack.c.bf16 %v2910_v38, %v2908_v44 }
 0x638   :  { %v2912_v30 = vpop.f32.mrf.mxu1 }
 0x640   :  { %v2914_v2 = vpop.f32.mrf.mxu1 }
 0x641   :  { %v1213_v43 = vpack.c.bf16 %v2914_v2, %v2912_v30 }
 0x648   :  { %v2916_v26 = vpop.f32.mrf.mxu1 }
 0x650   :  { %v2918_v45 = vpop.f32.mrf.mxu1 }
 0x651   :  { %v1214_v9 = vpack.c.bf16 %v2918_v45, %v2916_v26 }
 0x653   :  { %1215 = vmatpush.bf16.msra.mxu2 %v1214_v9 }
 0x657   :  { %1216 = vmatpush.bf16.msra.mxu2 %v1213_v43  ;;  %v3389_v43 = vunpack.c.h.bf16 %v2965_v24 }
 0x65b   :  { %1217 = vmatpush.bf16.msra.mxu2 %v1212_v32 }
 0x65f   :  { %1218 = vmatpush.bf16.msra.mxu2 %v1211_v11  ;;  %v2979_v11 = vld [vmem:[#allocation3 + $0x20] sm:$0xff]  }
 0x660   :  { %3475 = vst [vmem:[#allocation32_spill] sm:$0xff] %v2979_v11 }
 0x663   :  { %1219 = vmatpush.bf16.msra.mxu2 %v1210_v8 }
 0x667   :  { %1220 = vmatpush.bf16.msra.mxu2 %v1209_v15  ;;  %v3390_v15 = vunpack.c.l.bf16 %v2965_v24 }
 0x66b   :  { %1221 = vmatpush.bf16.msra.mxu2 %v1208_v4 }
 0x66f   :  { %1222 = vmatpush.bf16.msra.mxu2 %v1207_v34 }
 0x672   :  { %1223 = vmatmul.bf16.vlgmr.msra.gmra.mxu2 %v2864_v33 }
 0x682   :  { %1228 = vmatmul.bf16.gmra.mxu2 %v2867_v21 }
 0x692   :  { %1233 = vmatmul.bf16.gmra.mxu2 %v2870_v23 }
 0x6a2   :  { %1238 = vmatmul.bf16.gmra.mxu2 %v2873_v5 }
 0x6b2   :  { %1243 = vmatmul.bf16.gmra.mxu2 %v2876_v41 }
 0x6c2   :  { %1248 = vmatmul.bf16.gmra.mxu2 %v2879_v12 }
 0x6d2   :  { %1253 = vmatmul.bf16.gmra.mxu2 %v2882_v16 }
 0x6e2   :  { %1258 = vmatmul.bf16.gmra.mxu2 %v2885_v18 }
 0x6f5   :  { %v2944_v47 = vpop.f32.mrf.mxu2 }
 0x6fd   :  { %v2946_v50 = vpop.f32.mrf.mxu2 }
 0x705   :  { %v2948_v10 = vpop.f32.mrf.mxu2 }
 0x70d   :  { %v1231_v14 = vpop.f32.mrf.mxu2 }
 0x715   :  { %v1234_v25 = vpop.f32.mrf.mxu2 }
 0x71d   :  { %v1236_v13 = vpop.f32.mrf.mxu2 }
 0x725   :  { %v1239_v63 = vpop.f32.mrf.mxu2 }
 0x72d   :  { %v1241_v62 = vpop.f32.mrf.mxu2 }
 0x735   :  { %v1244_v54 = vpop.f32.mrf.mxu2 }
 0x73d   :  { %v1246_v27 = vpop.f32.mrf.mxu2 }
 0x73e   :  { %v1273_v8 = vmul.f32 2.0, %v1246_v27  ;;  %v1271_v27 = vmul.f32 2.0, %v1241_v62  ;;  %v1269_v62 = vmul.f32 2.0, %v1236_v13  ;;  %v1267_v13 = vmul.f32 2.0, %v1231_v14 }
 0x73f   :  { %v1265_v14 = vmul.f32 2.0, %v2946_v50 }
 0x745   :  { %v1249_v36 = vpop.f32.mrf.mxu2 }
 0x746   :  { %v1274_v9 = vmul.f32 2.0, %v1249_v36  ;;  %v1272_v36 = vmul.f32 2.0, %v1244_v54  ;;  %v1270_v54 = vmul.f32 2.0, %v1239_v63  ;;  %v1268_v63 = vmul.f32 2.0, %v1234_v25 }
 0x747   :  { %v1266_v25 = vmul.f32 2.0, %v2948_v10 }
 0x74d   :  { %v1251_v31 = vpop.f32.mrf.mxu2 }
 0x74e   :  { %v1275_v19 = vmul.f32 2.0, %v1251_v31  ;;  %v3391_v31 = vunpack.c.h.bf16 %v2979_v11 }
 0x750   :  { %v2984_v4 = vsub.f32 %v1275_v19, %v3389_v43 }
 0x752   :  { %3476 = vst [vmem:[#allocation27_spill] sm:$0xff] %v2984_v4 }
 0x755   :  { %v1254_v39 = vpop.f32.mrf.mxu2 }
 0x756   :  { %v1276_v58 = vmul.f32 2.0, %v1254_v39  ;;  %v2991_v39 = vsub.f32 %v1274_v9, %v3390_v15 }
 0x758   :  { %v2977_v32 = vsub.f32 %v1276_v58, %v3388_v40  ;;  %3477 = vst [vmem:[#allocation31_spill] sm:$0xff] %v2991_v39  ;;  %v3007_v58 = vld [vmem:[#allocation3 + $0x10] sm:$0xff]   ;;  %v1264_v40 = vmul.f32 2.0, %v2944_v47 }
 0x75a   :  { %3474 = vst [vmem:[#allocation33_spill] sm:$0xff] %v2977_v32 }
 0x75d   :  { %v1256_v28 = vpop.f32.mrf.mxu2 }
 0x75e   :  { %v1277_v61 = vmul.f32 2.0, %v1256_v28  ;;  %v2993_v28 = vld [vmem:[#allocation3 + $0x18] sm:$0xff]  }
 0x75f   :  { %v3394_v19 = vunpack.c.l.bf16 %v2993_v28 }
 0x760   :  { %v2970_v48 = vsub.f32 %v1277_v61, %v3387_v7  ;;  %v3393_v61 = vunpack.c.h.bf16 %v2993_v28 }
 0x762   :  { %3473 = vst [vmem:[#allocation29_spill] sm:$0xff] %v2970_v48  ;;  %v1336_v34 = vpack.c.bf16 %v2970_v48, %v2977_v32 }
 0x765   :  { %v1259_v49 = vpop.f32.mrf.mxu2 }
 0x766   :  { %v1278_v51 = vmul.f32 2.0, %v1259_v49  ;;  %v3392_v49 = vunpack.c.l.bf16 %v2979_v11 }
 0x768   :  { %v2959_v60 = vsub.f32 %v1278_v51, %v3386_v42  ;;  %v2998_v51 = vsub.f32 %v1273_v8, %v3391_v31  ;;  %v3395_v8 = vunpack.c.h.bf16 %v3007_v58 }
 0x76a   :  { %3470 = vst [vmem:[#allocation23_spill] sm:$0xff] %v2959_v60 }
 0x76b   :  { %3478 = vst [vmem:[#allocation30_spill] sm:$0xff] %v2998_v51 }
 0x76d   :  { %v1261_v35 = vpop.f32.mrf.mxu2 }
 0x76e   :  { %v1279_v56 = vmul.f32 2.0, %v1261_v35  ;;  %v1335_v35 = vpack.c.bf16 %v2984_v4, %v2991_v39 }
 0x770   :  { %v2963_v17 = vsub.f32 %v1279_v56, %v3385_v59  ;;  %v3005_v56 = vsub.f32 %v1272_v36, %v3392_v49  ;;  %v3021_v36 = vld [vmem:[#allocation3 + $0x8] sm:$0xff]  }
 0x771   :  { %v3397_v42 = vunpack.c.h.bf16 %v3021_v36  ;;  %v3398_v7 = vunpack.c.l.bf16 %v3021_v36 }
 0x772   :  { %3471 = vst [vmem:[#allocation35_spill] sm:$0xff] %v2963_v17  ;;  %v1337_v29 = vpack.c.bf16 %v2963_v17, %v2959_v60  ;;  %v1334_v9 = vpack.c.bf16 %v2998_v51, %v3005_v56 }
 0x773   :  { %3479 = vst [vmem:[#allocation28_spill] sm:$0xff] %v3005_v56 }
 0x774   :  { %1338 = vmatpush.bf16.msra.mxu3 %v1337_v29  ;;  %v3012_v29 = vsub.f32 %v1271_v27, %v3393_v61  ;;  %v3026_v27 = vsub.f32 %v1269_v62, %v3395_v8  ;;  %v3042_v62 = vsub.f32 %v1267_v13, %v3397_v42 }
 0x778   :  { %1339 = vmatpush.bf16.msra.mxu3 %v1336_v34  ;;  %v3019_v34 = vsub.f32 %v1270_v54, %v3394_v19 }
 0x77a   :  { %v1333_v59 = vpack.c.bf16 %v3012_v29, %v3019_v34 }
 0x77c   :  { %1340 = vmatpush.bf16.msra.mxu3 %v1335_v35  ;;  %v3396_v35 = vunpack.c.l.bf16 %v3007_v58 }
 0x77e   :  { %v3034_v54 = vsub.f32 %v1268_v63, %v3396_v35 }
 0x780   :  { %1341 = vmatpush.bf16.msra.mxu3 %v1334_v9  ;;  %v3036_v9 = vld [vmem:[#allocation3] sm:$0xff]   ;;  %v1332_v10 = vpack.c.bf16 %v3026_v27, %v3034_v54 }
 0x781   :  { %v3399_v43 = vunpack.c.h.bf16 %v3036_v9  ;;  %v3400_v50 = vunpack.c.l.bf16 %v3036_v9 }
 0x783   :  { %v3055_v63 = vsub.f32 %v1265_v14, %v3399_v43  ;;  %v3061_v15 = vsub.f32 %v1264_v40, %v3400_v50 }
 0x784   :  { %1342 = vmatpush.bf16.msra.mxu3 %v1333_v59  ;;  %v3050_v59 = vsub.f32 %v1266_v25, %v3398_v7 }
 0x785   :  { %v1330_v47 = vpack.c.bf16 %v3055_v63, %v3061_v15 }
 0x786   :  { %v1331_v13 = vpack.c.bf16 %v3042_v62, %v3050_v59 }
 0x788   :  { %1343 = vmatpush.bf16.msra.mxu3 %v1332_v10 }
 0x78c   :  { %1344 = vmatpush.bf16.msra.mxu3 %v1331_v13 }
 0x790   :  { %1345 = vmatpush.bf16.msra.mxu3 %v1330_v47 }
 0x793   :  { %1346 = vmatmul.bf16.vlgmr.msra.gmra.mxu3 %v2864_v33 }
 0x7a3   :  { %1351 = vmatmul.bf16.gmra.mxu3 %v2867_v21 }
 0x7b3   :  { %1356 = vmatmul.bf16.gmra.mxu3 %v2870_v23 }
 0x7c3   :  { %1361 = vmatmul.bf16.gmra.mxu3 %v2873_v5 }
 0x7d3   :  { %1366 = vmatmul.bf16.gmra.mxu3 %v2876_v41 }
 0x7e3   :  { %1371 = vmatmul.bf16.gmra.mxu3 %v2879_v12 }
 0x7f3   :  { %1376 = vmatmul.bf16.gmra.mxu3 %v2882_v16 }
 0x803   :  { %1381 = vmatmul.bf16.gmra.mxu3 %v2885_v18 }
 0x816   :  { %v1347_v40 = vpop.f32.mrf.mxu3 }
 0x817   :  { %v1387_v25 = vmul.f32 2.0, %v1347_v40 }
 0x819   :  { %v3074_v13 = vsub.f32 %v1387_v25, %v2888_v46 }
 0x81e   :  { %v1349_v14 = vpop.f32.mrf.mxu3 }
 0x81f   :  { %v1388_v10 = vmul.f32 2.0, %v1349_v14 }
 0x821   :  { %v3077_v47 = vsub.f32 %v1388_v10, %v2890_v20 }
 0x823   :  { %v1453_v31 = vpack.c.bf16 %v3077_v47, %v3074_v13 }
 0x826   :  { %v1352_v49 = vpop.f32.mrf.mxu3 }
 0x827   :  { %v1389_v61 = vmul.f32 2.0, %v1352_v49 }
 0x829   :  { %v3082_v35 = vsub.f32 %v1389_v61, %v2892_v22 }
 0x82e   :  { %v1354_v19 = vpop.f32.mrf.mxu3 }
 0x82f   :  { %v1390_v8 = vmul.f32 2.0, %v1354_v19 }
 0x831   :  { %v3085_v40 = vsub.f32 %v1390_v8, %v2894_v55 }
 0x833   :  { %v1454_v25 = vpack.c.bf16 %v3085_v40, %v3082_v35 }
 0x836   :  { %v1357_v14 = vpop.f32.mrf.mxu3 }
 0x837   :  { %v1391_v42 = vmul.f32 2.0, %v1357_v14 }
 0x839   :  { %v3090_v43 = vsub.f32 %v1391_v42, %v2896_v3 }
 0x83e   :  { %v1359_v10 = vpop.f32.mrf.mxu3 }
 0x83f   :  { %v1392_v7 = vmul.f32 2.0, %v1359_v10 }
 0x841   :  { %v3093_v49 = vsub.f32 %v1392_v7, %v2898_v6 }
 0x843   :  { %v1455_v61 = vpack.c.bf16 %v3093_v49, %v3090_v43 }
 0x846   :  { %v1362_v19 = vpop.f32.mrf.mxu3 }
 0x847   :  { %v1393_v50 = vmul.f32 2.0, %v1362_v19 }
 0x849   :  { %v3098_v60 = vsub.f32 %v1393_v50, %v2900_v53 }
 0x84b   :  { %3480 = vst [vmem:[#allocation36_spill] sm:$0xff] %v3098_v60 }
 0x84e   :  { %v1364_v8 = vpop.f32.mrf.mxu3 }
 0x84f   :  { %v1394_v17 = vmul.f32 2.0, %v1364_v8 }
 0x851   :  { %v3101_v14 = vsub.f32 %v1394_v17, %v2902_v1 }
 0x853   :  { %3481 = vst [vmem:[#allocation26_spill] sm:$0xff] %v3101_v14  ;;  %v1456_v42 = vpack.c.bf16 %v3101_v14, %v3098_v60 }
 0x856   :  { %v1367_v10 = vpop.f32.mrf.mxu3 }
 0x85e   :  { %v1369_v0 = vpop.f32.mrf.mxu3 }
 0x866   :  { %v1372_v7 = vpop.f32.mrf.mxu3 }
 0x867   :  { %v1397_v60 = vmul.f32 2.0, %v1372_v7  ;;  %v1658_v7 = vld [vmem:[#allocation12 + $0x10] sm:$0xff] }
 0x86e   :  { %v1374_v48 = vpop.f32.mrf.mxu3 }
 0x86f   :  { %v1398_v56 = vmul.f32 2.0, %v1374_v48  ;;  %v3125_v48 = vsub.f32 %v1397_v60, %v2908_v44  ;;  %v1671_v60 = vld [vmem:[#allocation12 + $0x78] sm:$0xff] }
 0x870   :  { %1676 = vmatpush.msra.mxu1 %v1671_v60 }
 0x876   :  { %v1377_v32 = vpop.f32.mrf.mxu3 }
 0x877   :  { %v1399_v51 = vmul.f32 2.0, %v1377_v32  ;;  %v3120_v32 = vsub.f32 %v1398_v56, %v2910_v38  ;;  %v1670_v56 = vld [vmem:[#allocation12 + $0x70] sm:$0xff] }
 0x878   :  { %1677 = vmatpush.msra.mxu1 %v1670_v56  ;;  %v3155_v56 = vstv %s1919_s8 }
 0x87e   :  { %v1379_v52 = vpop.f32.mrf.mxu3 }
 0x87f   :  { %v1400_v24 = vmul.f32 2.0, %v1379_v52  ;;  %v1396_v52 = vmul.f32 2.0, %v1369_v0 }
 0x881   :  { %v3112_v11 = vsub.f32 %v1400_v24, %v2914_v2  ;;  %v3128_v24 = vsub.f32 %v1396_v52, %v2906_v37  ;;  %v3145_v52 = vstv %s1917_s28 }
 0x882   :  { %v1176_v60 = vmul.f32 %v3145_v52, %v2890_v20 }
 0x886   :  { %v1382_v4 = vpop.f32.mrf.mxu3 }
 0x887   :  { %v1401_v39 = vmul.f32 2.0, %v1382_v4  ;;  %v3117_v4 = vsub.f32 %v1399_v51, %v2912_v30  ;;  %v1458_v51 = vpack.c.bf16 %v3120_v32, %v3125_v48 }
 0x889   :  { %v3106_v50 = vsub.f32 %v1401_v39, %v2916_v26  ;;  %v1459_v39 = vpack.c.bf16 %v3112_v11, %v3117_v4 }
 0x88e   :  { %v1384_v19 = vpop.f32.mrf.mxu3 }
 0x88f   :  { %v1402_v8 = vmul.f32 2.0, %v1384_v19  ;;  %v1395_v19 = vmul.f32 2.0, %v1367_v10  ;;  %v1659_v10 = vld [vmem:[#allocation12 + $0x18] sm:$0xff] }
 0x891   :  { %v3109_v17 = vsub.f32 %v1402_v8, %v2918_v45  ;;  %v1657_v8 = vld [vmem:[#allocation12 + $0x8] sm:$0xff] }
 0x893   :  { %v1460_v14 = vpack.c.bf16 %v3109_v17, %v3106_v50 }
 0x895   :  { %1461 = vmatpush.bf16.msra.mxu0 %v1460_v14  ;;  %v3133_v14 = vsub.f32 %v1395_v19, %v2904_v57 }
 0x897   :  { %v1457_v0 = vpack.c.bf16 %v3128_v24, %v3133_v14 }
 0x899   :  { %1462 = vmatpush.bf16.msra.mxu0 %v1459_v39 }
 0x89d   :  { %1463 = vmatpush.bf16.msra.mxu0 %v1458_v51  ;;  %v3147_v51 = vstv %s1916_s29 }
 0x8a1   :  { %1464 = vmatpush.bf16.msra.mxu0 %v1457_v0  ;;  %v3149_v0 = vstv %s1918_s30 }
 0x8a2   :  { %v1299_v20 = vmul.f32 %v3149_v0, %v3055_v63 }
 0x8a5   :  { %1465 = vmatpush.bf16.msra.mxu0 %v1456_v42  ;;  %v1669_v42 = vld [vmem:[#allocation12 + $0x68] sm:$0xff] }
 0x8a6   :  { %1678 = vmatpush.msra.mxu1 %v1669_v42  ;;  %v3482_v42 = vunpack.c.l.bf16 %v3036_v9 }
 0x8a9   :  { %1466 = vmatpush.bf16.msra.mxu0 %v1455_v61  ;;  %v1660_v61 = vld [vmem:[#allocation12 + $0x20] sm:$0xff] }
 0x8ad   :  { %1467 = vmatpush.bf16.msra.mxu0 %v1454_v25  ;;  %v1668_v25 = vld [vmem:[#allocation12 + $0x60] sm:$0xff] }
 0x8ae   :  { %1679 = vmatpush.msra.mxu1 %v1668_v25  ;;  %v1157_v25 = vmul.f32 %v3147_v51, %v3482_v42 }
 0x8b1   :  { %1468 = vmatpush.bf16.msra.mxu0 %v1453_v31  ;;  %v1667_v31 = vld [vmem:[#allocation12 + $0x58] sm:$0xff] }
 0x8b2   :  { %1680 = vmatpush.msra.mxu1 %v1667_v31  ;;  %v1298_v31 = vmul.f32 %v3149_v0, %v3061_v15 }
 0x8b4   :  { %1469 = vmatmul.bf16.vlgmr.msra.gmra.mxu0 %v2864_v33  ;;  %v1666_v33 = vld [vmem:[#allocation12 + $0x50] sm:$0xff] }
 0x8b5   :  { %1681 = vmatpush.msra.mxu1 %v1666_v33 }
 0x8c4   :  { %1474 = vmatmul.bf16.gmra.mxu0 %v2867_v21  ;;  %v1665_v21 = vld [vmem:[#allocation12 + $0x48] sm:$0xff] }
 0x8c5   :  { %1682 = vmatpush.msra.mxu1 %v1665_v21  ;;  %v3483_v21 = vunpack.c.h.bf16 %v3036_v9 }
 0x8d4   :  { %1479 = vmatmul.bf16.gmra.mxu0 %v2870_v23  ;;  %v1664_v23 = vld [vmem:[#allocation12 + $0x40] sm:$0xff] }
 0x8d5   :  { %1683 = vmatpush.msra.mxu1 %v1664_v23  ;;  %v1158_v23 = vmul.f32 %v3147_v51, %v3483_v21 }
 0x8e4   :  { %1484 = vmatmul.bf16.gmra.mxu0 %v2873_v5  ;;  %v1663_v5 = vld [vmem:[#allocation12 + $0x38] sm:$0xff] }
 0x8e5   :  { %1684 = vmatpush.msra.mxu1 %v1663_v5  ;;  %v3166_v5 = vstv %s1920_s11 }
 0x8f4   :  { %1489 = vmatmul.bf16.gmra.mxu0 %v2876_v41  ;;  %v1662_v41 = vld [vmem:[#allocation12 + $0x30] sm:$0xff] }
 0x8f5   :  { %1685 = vmatpush.msra.mxu1 %v1662_v41  ;;  %v1421_v41 = vmul.f32 %v3155_v56, %v3074_v13 }
 0x904   :  { %1494 = vmatmul.bf16.gmra.mxu0 %v2879_v12  ;;  %v1661_v12 = vld [vmem:[#allocation12 + $0x28] sm:$0xff] }
 0x905   :  { %1686 = vmatpush.msra.mxu1 %v1661_v12  ;;  %v1192_v12 = vadd.f32 %v1176_v60, %v1158_v23 }
 0x907   :  { %1687 = vmatpush.msra.mxu1 %v1660_v61 }
 0x909   :  { %1688 = vmatpush.msra.mxu1 %v1659_v10 }
 0x90b   :  { %1689 = vmatpush.msra.mxu1 %v1658_v7  ;;  %v1422_v7 = vmul.f32 %v3155_v56, %v3077_v47 }
 0x90d   :  { %1690 = vmatpush.msra.mxu1 %v1657_v8 }
 0x914   :  { %1499 = vmatmul.bf16.gmra.mxu0 %v2882_v16  ;;  %v1656_v16 = vld [vmem:[#allocation12] sm:$0xff] }
 0x915   :  { %1691 = vmatpush.msra.mxu1 %v1656_v16  ;;  %v1315_v16 = vadd.f32 %v1299_v20, %v1192_v12  ;;  %v1300_v20 = vmul.f32 %v3149_v0, %v3050_v59  ;;  %v3485_v12 = vunpack.c.h.bf16 %v3021_v36 }
 0x924   :  { %1504 = vmatmul.bf16.gmra.mxu0 %v2885_v18  ;;  %v1175_v18 = vmul.f32 %v3145_v52, %v2888_v46 }
 0x926   :  { %v1191_v46 = vadd.f32 %v1175_v18, %v1157_v25 }
 0x928   :  { %v1314_v10 = vadd.f32 %v1298_v31, %v1191_v46  ;;  %v1177_v31 = vmul.f32 %v3145_v52, %v2892_v22  ;;  %v3484_v46 = vunpack.c.l.bf16 %v3021_v36  ;;  %v1301_v22 = vmul.f32 %v3149_v0, %v3042_v62 }
 0x92a   :  { %v1437_v8 = vadd.f32 %v1421_v41, %v1314_v10 }
 0x931   :  { %v1470_v39 = vpop.f32.mrf.mxu0 }
 0x932   :  { %v1510_v19 = vmul.f32 2.0, %v1470_v39 }
 0x934   :  { %v1526_v33 = vsub.f32 %v1510_v19, %v3061_v15  ;;  %v1438_v19 = vadd.f32 %v1422_v7, %v1315_v16 }
 0x936   :  { %v1544_v15 = vmul.f32 %v3166_v5, %v1526_v33  ;;  %v1178_v33 = vmul.f32 %v3145_v52, %v2894_v55  ;;  %v1423_v55 = vmul.f32 %v3155_v56, %v3082_v35 }
 0x938   :  { %v1560_v18 = vadd.f32 %v1544_v15, %v1437_v8  ;;  %v1424_v8 = vmul.f32 %v3155_v56, %v3085_v40  ;;  %v1179_v40 = vmul.f32 %v3145_v52, %v2896_v3  ;;  %v1303_v3 = vmul.f32 %v3149_v0, %v3026_v27 }
 0x939   :  { %v1472_v61 = vpop.f32.mrf.mxu0 }
 0x93a   :  { %v1511_v9 = vmul.f32 2.0, %v1472_v61  ;;  %v1576_v13 = vmax.f32 %v1560_v18, 0.0  ;;  %v1160_v61 = vmul.f32 %v3147_v51, %v3485_v12 }
 0x93c   :  { %v1527_v39 = vsub.f32 %v1511_v9, %v3055_v63  ;;  %v1159_v63 = vmul.f32 %v3147_v51, %v3484_v46  ;;  %1692 = vmatmul.f32.vlgmr.msra.gmra.mxu1 %v1576_v13  ;;  %v1194_v7 = vadd.f32 %v1178_v33, %v1160_v61  ;;  %v1180_v33 = vmul.f32 %v3145_v52, %v2898_v6 }
 0x93d   :  { %v3486_v46 = vunpack.c.l.bf16 %v3007_v58  ;;  %v1425_v6 = vmul.f32 %v3155_v56, %v3090_v43 }
 0x93e   :  { %v1545_v42 = vmul.f32 %v3166_v5, %v1527_v39  ;;  %v1193_v10 = vadd.f32 %v1177_v31, %v1159_v63  ;;  %v1317_v39 = vadd.f32 %v1301_v22, %v1194_v7  ;;  %v1302_v63 = vmul.f32 %v3149_v0, %v3034_v54 }
 0x940   :  { %v1561_v25 = vadd.f32 %v1545_v42, %v1438_v19  ;;  %v1316_v9 = vadd.f32 %v1300_v20, %v1193_v10  ;;  %v1440_v18 = vadd.f32 %v1424_v8, %v1317_v39  ;;  %v3487_v20 = vunpack.c.h.bf16 %v3007_v58 }
 0x941   :  { %v1475_v21 = vpop.f32.mrf.mxu0 }
 0x942   :  { %v1577_v60 = vmax.f32 %v1561_v25, 0.0  ;;  %v1512_v23 = vmul.f32 2.0, %v1475_v21  ;;  %v1439_v36 = vadd.f32 %v1423_v55, %v1316_v9  ;;  %v1426_v55 = vmul.f32 %v3155_v56, %v3093_v49 }
 0x943   :  { %v1181_v49 = vmul.f32 %v3145_v52, %v2900_v53  ;;  %v1305_v53 = vmul.f32 %v3149_v0, %v3012_v29 }
 0x944   :  { %v2037_v47 = vpack.c.bf16 %v1577_v60, %v1576_v13  ;;  %v1528_v41 = vsub.f32 %v1512_v23, %v3050_v59  ;;  %1695 = vmatmul.f32.gmra.mxu1 %v1577_v60 }
 0x946   :  { %2038 = vst [vmem:[#allocation3] sm:$0xff] %v2037_v47   ;;  %v1546_v59 = vmul.f32 %v3166_v5, %v1528_v41  ;;  %v1162_v41 = vmul.f32 %v3147_v51, %v3487_v20 }
 0x948   :  { %v1562_v42 = vadd.f32 %v1546_v59, %v1439_v36  ;;  %v1196_v61 = vadd.f32 %v1180_v33, %v1162_v41 }
 0x949   :  { %v1477_v15 = vpop.f32.mrf.mxu0 }
 0x94a   :  { %v1513_v16 = vmul.f32 2.0, %v1477_v15  ;;  %v1578_v13 = vmax.f32 %v1562_v42, 0.0  ;;  %v1319_v15 = vadd.f32 %v1303_v3, %v1196_v61 }
 0x94c   :  { %v1529_v19 = vsub.f32 %v1513_v16, %v3042_v62  ;;  %v1161_v62 = vmul.f32 %v3147_v51, %v3486_v46  ;;  %1698 = vmatmul.f32.gmra.mxu1 %v1578_v13  ;;  %v1442_v8 = vadd.f32 %v1426_v55, %v1319_v15 }
 0x94e   :  { %v1547_v25 = vmul.f32 %v3166_v5, %v1529_v19  ;;  %v1195_v12 = vadd.f32 %v1179_v40, %v1161_v62 }
 0x950   :  { %v1563_v21 = vadd.f32 %v1547_v25, %v1440_v18  ;;  %v1318_v22 = vadd.f32 %v1302_v63, %v1195_v12  ;;  %v1182_v25 = vmul.f32 %v3145_v52, %v2902_v1  ;;  %v3491_v63 = vld [vmem:[#allocation26_spill] sm:$0xff] }
 0x951   :  { %v1480_v35 = vpop.f32.mrf.mxu0 }
 0x952   :  { %v1579_v23 = vmax.f32 %v1563_v21, 0.0  ;;  %v1514_v31 = vmul.f32 2.0, %v1480_v35  ;;  %v1441_v58 = vadd.f32 %v1425_v6, %v1318_v22  ;;  %v3488_v21 = vunpack.c.l.bf16 %v2993_v28 }
 0x953   :  { %v1304_v35 = vmul.f32 %v3149_v0, %v3019_v34 }
 0x954   :  { %v2042_v47 = vpack.c.bf16 %v1579_v23, %v1578_v13  ;;  %v1530_v60 = vsub.f32 %v1514_v31, %v3034_v54  ;;  %1701 = vmatmul.f32.gmra.mxu1 %v1579_v23  ;;  %v3489_v23 = vunpack.c.h.bf16 %v2993_v28 }
 0x956   :  { %2120 = vst [vmem:[#allocation3 + $0x8] sm:$0xff] %v2042_v47   ;;  %v1548_v54 = vmul.f32 %v3166_v5, %v1530_v60  ;;  %v1164_v31 = vmul.f32 %v3147_v51, %v3489_v23  ;;  %v3490_v47 = vld [vmem:[#allocation36_spill] sm:$0xff]  ;;  %v1428_v60 = vmul.f32 %v3155_v56, %v3491_v63 }
 0x957   :  { %v1427_v1 = vmul.f32 %v3155_v56, %v3490_v47 }
 0x958   :  { %v1564_v59 = vadd.f32 %v1548_v54, %v1441_v58  ;;  %v1198_v33 = vadd.f32 %v1182_v25, %v1164_v31  ;;  %v1183_v58 = vmul.f32 %v3145_v52, %v2904_v57  ;;  %v3496_v57 = vld [vmem:[#allocation30_spill] sm:$0xff] }
 0x959   :  { %v1482_v10 = vpop.f32.mrf.mxu0 }
 0x95a   :  { %v1515_v7 = vmul.f32 2.0, %v1482_v10  ;;  %v1580_v39 = vmax.f32 %v1564_v59, 0.0  ;;  %v1321_v41 = vadd.f32 %v1305_v53, %v1198_v33 }
 0x95c   :  { %v1531_v9 = vsub.f32 %v1515_v7, %v3026_v27  ;;  %v1163_v27 = vmul.f32 %v3147_v51, %v3488_v21  ;;  %1704 = vmatmul.f32.gmra.mxu1 %v1580_v39  ;;  %v1444_v3 = vadd.f32 %v1428_v60, %v1321_v41 }
 0x95e   :  { %v1549_v16 = vmul.f32 %v3166_v5, %v1531_v9  ;;  %v1197_v40 = vadd.f32 %v1181_v49, %v1163_v27  ;;  %v1184_v9 = vmul.f32 %v3145_v52, %v2906_v37  ;;  %v1307_v49 = vmul.f32 %v3149_v0, %v3496_v57 }
 0x95f   :  { %v1429_v37 = vmul.f32 %v3155_v56, %v3133_v14  ;;  %v1430_v27 = vmul.f32 %v3155_v56, %v3128_v24  ;;  %v1185_v24 = vmul.f32 %v3145_v52, %v2908_v44  ;;  %v3501_v44 = vld [vmem:[#allocation27_spill] sm:$0xff] }
 0x960   :  { %v1565_v36 = vadd.f32 %v1549_v16, %v1442_v8  ;;  %v1320_v62 = vadd.f32 %v1304_v35, %v1197_v40  ;;  %v3492_v8 = vld [vmem:[#allocation32_spill] sm:$0xff] }
 0x961   :  { %v1485_v43 = vpop.f32.mrf.mxu0  ;;  %v3493_v59 = vunpack.c.l.bf16 %v3492_v8  ;;  %v3494_v16 = vld [vmem:[#allocation28_spill] sm:$0xff] }
 0x962   :  { %v1581_v19 = vmax.f32 %v1565_v36, 0.0  ;;  %v1516_v18 = vmul.f32 2.0, %v1485_v43  ;;  %v1443_v28 = vadd.f32 %v1427_v1, %v1320_v62  ;;  %v1306_v36 = vmul.f32 %v3149_v0, %v3494_v16 }
 0x964   :  { %v2047_v42 = vpack.c.bf16 %v1581_v19, %v1580_v39  ;;  %v1532_v13 = vsub.f32 %v1516_v18, %v3019_v34  ;;  %1707 = vmatmul.f32.gmra.mxu1 %v1581_v19  ;;  %v3495_v39 = vunpack.c.h.bf16 %v3492_v8 }
 0x966   :  { %2121 = vst [vmem:[#allocation3 + $0x10] sm:$0xff] %v2047_v42   ;;  %v1550_v34 = vmul.f32 %v3166_v5, %v1532_v13  ;;  %v1166_v19 = vmul.f32 %v3147_v51, %v3495_v39 }
 0x968   :  { %v1566_v6 = vadd.f32 %v1550_v34, %v1443_v28  ;;  %v1200_v42 = vadd.f32 %v1184_v9, %v1166_v19  ;;  %v1186_v34 = vmul.f32 %v3145_v52, %v2910_v38  ;;  %v1431_v38 = vmul.f32 %v3155_v56, %v3125_v48 }
 0x969   :  { %v1487_v46 = vpop.f32.mrf.mxu0 }
 0x96a   :  { %v1517_v20 = vmul.f32 2.0, %v1487_v46  ;;  %v1582_v55 = vmax.f32 %v1566_v6, 0.0  ;;  %v1323_v31 = vadd.f32 %v1307_v49, %v1200_v42  ;;  %v1188_v42 = vmul.f32 %v3145_v52, %v2914_v2 }
 0x96b   :  { %v1433_v2 = vmul.f32 %v3155_v56, %v3117_v4 }
 0x96c   :  { %v1533_v12 = vsub.f32 %v1517_v20, %v3012_v29  ;;  %v1165_v29 = vmul.f32 %v3147_v51, %v3493_v59  ;;  %1710 = vmatmul.f32.gmra.mxu1 %v1582_v55  ;;  %v1446_v53 = vadd.f32 %v1430_v27, %v1323_v31  ;;  %v3497_v20 = vld [vmem:[#allocation34_spill] sm:$0xff] }
 0x96d   :  { %v3498_v28 = vunpack.c.l.bf16 %v3497_v20 }
 0x96e   :  { %v1551_v61 = vmul.f32 %v3166_v5, %v1533_v12  ;;  %v1199_v18 = vadd.f32 %v1183_v58, %v1165_v29  ;;  %v3499_v12 = vld [vmem:[#allocation31_spill] sm:$0xff] }
 0x96f   :  { %v1167_v41 = vmul.f32 %v3147_v51, %v3498_v28 }
 0x970   :  { %v1567_v10 = vadd.f32 %v1551_v61, %v1444_v3  ;;  %v1322_v21 = vadd.f32 %v1306_v36, %v1199_v18  ;;  %v1308_v3 = vmul.f32 %v3149_v0, %v3499_v12  ;;  %v3500_v61 = vunpack.c.h.bf16 %v3497_v20 }
 0x971   :  { %v1490_v22 = vpop.f32.mrf.mxu0 }
 0x972   :  { %v1583_v54 = vmax.f32 %v1567_v10, 0.0  ;;  %v1518_v7 = vmul.f32 2.0, %v1490_v22  ;;  %v1445_v23 = vadd.f32 %v1429_v37, %v1322_v21  ;;  %v1168_v10 = vmul.f32 %v3147_v51, %v3500_v61 }
 0x973   :  { %v1201_v22 = vadd.f32 %v1185_v24, %v1167_v41 }
 0x974   :  { %v2052_v15 = vpack.c.bf16 %v1583_v54, %v1582_v55  ;;  %v1534_v43 = vsub.f32 %v1518_v7, %v3494_v16  ;;  %1713 = vmatmul.f32.gmra.mxu1 %v1583_v54  ;;  %v1309_v55 = vmul.f32 %v3149_v0, %v3501_v44  ;;  %v1202_v54 = vadd.f32 %v1186_v34, %v1168_v10 }
 0x975   :  { %v1324_v58 = vadd.f32 %v1308_v3, %v1201_v22  ;;  %v1190_v22 = vmul.f32 %v3145_v52, %v2918_v45  ;;  %v1435_v45 = vmul.f32 %v3155_v56, %v3106_v50 }
 0x976   :  { %2122 = vst [vmem:[#allocation3 + $0x18] sm:$0xff] %v2052_v15   ;;  %v1552_v35 = vmul.f32 %v3166_v5, %v1534_v43  ;;  %v1432_v15 = vmul.f32 %v3155_v56, %v3120_v32  ;;  %v1325_v29 = vadd.f32 %v1309_v55, %v1202_v54  ;;  %v1187_v32 = vmul.f32 %v3145_v52, %v2912_v30  ;;  %v3506_v30 = vld [vmem:[#allocation29_spill] sm:$0xff]  ;;  %v3509_v54 = vld [vmem:[#allocation23_spill] sm:$0xff] }
 0x977   :  { %v1447_v59 = vadd.f32 %v1431_v38, %v1324_v58 }
 0x978   :  { %v1568_v47 = vadd.f32 %v1552_v35, %v1445_v23  ;;  %v1448_v36 = vadd.f32 %v1432_v15, %v1325_v29  ;;  %v3504_v35 = vld [vmem:[#allocation33_spill] sm:$0xff] }
 0x979   :  { %v1492_v25 = vpop.f32.mrf.mxu0 }
 0x97a   :  { %v1519_v13 = vmul.f32 2.0, %v1492_v25  ;;  %v1584_v46 = vmax.f32 %v1568_v47, 0.0  ;;  %v3502_v25 = vld [vmem:[#allocation24_spill] sm:$0xff]  ;;  %v1311_v47 = vmul.f32 %v3149_v0, %v3506_v30 }
 0x97b   :  { %v3503_v21 = vunpack.c.l.bf16 %v3502_v25  ;;  %v3505_v31 = vunpack.c.h.bf16 %v3502_v25 }
 0x97c   :  { %v1535_v40 = vsub.f32 %v1519_v13, %v3496_v57  ;;  %1716 = vmatmul.f32.gmra.mxu1 %v1584_v46  ;;  %v1310_v13 = vmul.f32 %v3149_v0, %v3504_v35 }
 0x97d   :  { %v1169_v27 = vmul.f32 %v3147_v51, %v3503_v21 }
 0x97e   :  { %v1553_v1 = vmul.f32 %v3166_v5, %v1535_v40  ;;  %v1170_v40 = vmul.f32 %v3147_v51, %v3505_v31 }
 0x980   :  { %v1569_v33 = vadd.f32 %v1553_v1, %v1446_v53  ;;  %v1203_v53 = vadd.f32 %v1187_v32, %v1169_v27  ;;  %v1204_v1 = vadd.f32 %v1188_v42, %v1170_v40 }
 0x981   :  { %v1495_v14 = vpop.f32.mrf.mxu0 }
 0x982   :  { %v1585_v62 = vmax.f32 %v1569_v33, 0.0  ;;  %v1520_v63 = vmul.f32 2.0, %v1495_v14  ;;  %v1326_v14 = vadd.f32 %v1310_v13, %v1203_v53 }
 0x984   :  { %v2057_v60 = vpack.c.bf16 %v1585_v62, %v1584_v46  ;;  %v1536_v6 = vsub.f32 %v1520_v63, %v3499_v12  ;;  %1719 = vmatmul.f32.gmra.mxu1 %v1585_v62  ;;  %v1434_v46 = vmul.f32 %v3155_v56, %v3112_v11  ;;  %v1449_v24 = vadd.f32 %v1433_v2, %v1326_v14 }
 0x985   :  { %v1189_v11 = vmul.f32 %v3145_v52, %v2916_v26  ;;  %v3511_v26 = vld [vmem:[#allocation35_spill] sm:$0xff] }
 0x986   :  { %2123 = vst [vmem:[#allocation3 + $0x20] sm:$0xff] %v2057_v60   ;;  %v1554_v9 = vmul.f32 %v3166_v5, %v1536_v6  ;;  %v1327_v60 = vadd.f32 %v1311_v47, %v1204_v1 }
 0x988   :  { %v1570_v43 = vadd.f32 %v1554_v9, %v1447_v59  ;;  %v1450_v20 = vadd.f32 %v1434_v46, %v1327_v60  ;;  %v1313_v59 = vmul.f32 %v3149_v0, %v3511_v26 }
 0x989   :  { %v1497_v7 = vpop.f32.mrf.mxu0 }
 0x98a   :  { %v1521_v8 = vmul.f32 2.0, %v1497_v7  ;;  %v1586_v18 = vmax.f32 %v1570_v43, 0.0  ;;  %v1312_v7 = vmul.f32 %v3149_v0, %v3509_v54 }
 0x98c   :  { %v1537_v16 = vsub.f32 %v1521_v8, %v3501_v44  ;;  %1722 = vmatmul.f32.gmra.mxu1 %v1586_v18  ;;  %v3507_v44 = vld [vmem:[#allocation25_spill] sm:$0xff] }
 0x98d   :  { %v3508_v55 = vunpack.c.l.bf16 %v3507_v44  ;;  %v3510_v15 = vunpack.c.h.bf16 %v3507_v44 }
 0x98e   :  { %v1555_v39 = vmul.f32 %v3166_v5, %v1537_v16 }
 0x98f   :  { %v1171_v38 = vmul.f32 %v3147_v51, %v3508_v55  ;;  %v1172_v9 = vmul.f32 %v3147_v51, %v3510_v15 }
 0x990   :  { %v1571_v19 = vadd.f32 %v1555_v39, %v1448_v36  ;;  %v1436_v36 = vmul.f32 %v3155_v56, %v3109_v17  ;;  %v2168_v17 = vld [vmem:[%s3346_s6] ss:$0 sm:$0xff]  ;;  %s2319_s6 = smov [#allocation13]  }
 0x991   :  { %v1500_v48 = vpop.f32.mrf.mxu0  ;;  %v1205_v8 = vadd.f32 %v1189_v11, %v1171_v38  ;;  %v1206_v52 = vadd.f32 %v1190_v22, %v1172_v9  ;;  %s1761_s2 = sshll.u32 %s2319_s6, 4  ;;  %s1762_s2 = int_to_ptr.vmem [resolvable:$true] %s1761_s2 }
 0x992   :  { %v1587_v57 = vmax.f32 %v1571_v19, 0.0  ;;  %v1522_v49 = vmul.f32 2.0, %v1500_v48 }
 0x993   :  { %v1328_v16 = vadd.f32 %v1312_v7, %v1205_v8  ;;  %v1329_v48 = vadd.f32 %v1313_v59, %v1206_v52 }
 0x994   :  { %v2062_v37 = vpack.c.bf16 %v1587_v57, %v1586_v18  ;;  %v1538_v23 = vsub.f32 %v1522_v49, %v3504_v35  ;;  %1725 = vmatmul.f32.gmra.mxu1 %v1587_v57 }
 0x995   :  { %v1451_v19 = vadd.f32 %v1435_v45, %v1328_v16  ;;  %v1452_v18 = vadd.f32 %v1436_v36, %v1329_v48 }
 0x996   :  { %2124 = vst [vmem:[#allocation3 + $0x28] sm:$0xff] %v2062_v37   ;;  %v1556_v62 = vmul.f32 %v3166_v5, %v1538_v23 }
 0x998   :  { %v1572_v28 = vadd.f32 %v1556_v62, %v1449_v24 }
 0x999   :  { %v1502_v33 = vpop.f32.mrf.mxu0 }
 0x99a   :  { %v1523_v63 = vmul.f32 2.0, %v1502_v33  ;;  %v1588_v3 = vmax.f32 %v1572_v28, 0.0 }
 0x99c   :  { %v1539_v34 = vsub.f32 %v1523_v63, %v3506_v30  ;;  %1728 = vmatmul.f32.gmra.mxu1 %v1588_v3 }
 0x99e   :  { %v1557_v41 = vmul.f32 %v3166_v5, %v1539_v34 }
 0x9a0   :  { %v1573_v12 = vadd.f32 %v1557_v41, %v1450_v20 }
 0x9a1   :  { %v1505_v4 = vpop.f32.mrf.mxu0 }
 0x9a2   :  { %v1589_v6 = vmax.f32 %v1573_v12, 0.0  ;;  %v1524_v61 = vmul.f32 2.0, %v1505_v4 }
 0x9a4   :  { %v2067_v10 = vpack.c.bf16 %v1589_v6, %v1588_v3  ;;  %v1540_v58 = vsub.f32 %v1524_v61, %v3509_v54  ;;  %1731 = vmatmul.f32.gmra.mxu1 %v1589_v6 }
 0x9a6   :  { %2125 = vst [vmem:[#allocation3 + $0x30] sm:$0xff] %v2067_v10   ;;  %v1558_v43 = vmul.f32 %v3166_v5, %v1540_v58 }
 0x9a8   :  { %v1574_v57 = vadd.f32 %v1558_v43, %v1451_v19 }
 0x9a9   :  { %v1507_v29 = vpop.f32.mrf.mxu0 }
 0x9aa   :  { %v1525_v39 = vmul.f32 2.0, %v1507_v29  ;;  %v1590_v50 = vmax.f32 %v1574_v57, 0.0 }
 0x9ac   :  { %v1541_v51 = vsub.f32 %v1525_v39, %v3511_v26  ;;  %1734 = vmatmul.f32.gmra.mxu1 %v1590_v50 }
 0x9ae   :  { %v1559_v0 = vmul.f32 %v3166_v5, %v1541_v51 }
 0x9b0   :  { %v1575_v49 = vadd.f32 %v1559_v0, %v1452_v18 }
 0x9b2   :  { %v1591_v32 = vmax.f32 %v1575_v49, 0.0 }
 0x9b4   :  { %v2072_v37 = vpack.c.bf16 %v1591_v32, %v1590_v50  ;;  %1737 = vmatmul.f32.gmra.mxu1 %v1591_v32 }
 0x9b6   :  { %2126 = vst [vmem:[#allocation3 + $0x38] sm:$0xff] %v2072_v37  }
 0x9b9   :  { %v1693_v56 = vpop.f32.mrf.mxu1 }
 0x9ba   :  { %v1694_v42 = vadd.f32 %v2168_v17, %v1693_v56 }
 0x9bc   :  { %1741 = vst [vmem:[#allocation13] sm:$0xff] %v1694_v42 }
 0x9c1   :  { %v1696_v25 = vpop.f32.mrf.mxu1 }
 0x9c2   :  { %v1697_v21 = vadd.f32 %v2168_v17, %v1696_v25 }
 0x9c4   :  { %1742 = vst [vmem:[#allocation13 + $0x8] sm:$0xff] %v1697_v21 }
 0x9c9   :  { %v1699_v27 = vpop.f32.mrf.mxu1 }
 0x9ca   :  { %v1700_v5 = vadd.f32 %v2168_v17, %v1699_v27 }
 0x9cc   :  { %1743 = vst [vmem:[#allocation13 + $0x10] sm:$0xff] %v1700_v5 }
 0x9d1   :  { %v1702_v35 = vpop.f32.mrf.mxu1 }
 0x9d2   :  { %v1703_v13 = vadd.f32 %v2168_v17, %v1702_v35 }
 0x9d4   :  { %1744 = vst [vmem:[#allocation13 + $0x18] sm:$0xff] %v1703_v13 }
 0x9d9   :  { %v1705_v23 = vpop.f32.mrf.mxu1 }
 0x9da   :  { %v1706_v31 = vadd.f32 %v2168_v17, %v1705_v23 }
 0x9dc   :  { %1745 = vst [vmem:[#allocation13 + $0x20] sm:$0xff] %v1706_v31 }
 0x9e1   :  { %v1708_v40 = vpop.f32.mrf.mxu1 }
 0x9e2   :  { %v1709_v53 = vadd.f32 %v2168_v17, %v1708_v40 }
 0x9e4   :  { %1746 = vst [vmem:[#allocation13 + $0x28] sm:$0xff] %v1709_v53 }
 0x9e9   :  { %v1711_v30 = vpop.f32.mrf.mxu1 }
 0x9ea   :  { %v1712_v47 = vadd.f32 %v2168_v17, %v1711_v30 }
 0x9ec   :  { %1747 = vst [vmem:[#allocation13 + $0x30] sm:$0xff] %v1712_v47 }
 0x9f1   :  { %v1714_v2 = vpop.f32.mrf.mxu1 }
 0x9f2   :  { %v1715_v1 = vadd.f32 %v2168_v17, %v1714_v2 }
 0x9f4   :  { %1748 = vst [vmem:[#allocation13 + $0x38] sm:$0xff] %v1715_v1 }
 0x9f9   :  { %v1717_v33 = vpop.f32.mrf.mxu1 }
 0x9fa   :  { %v1718_v14 = vadd.f32 %v2168_v17, %v1717_v33 }
 0x9fc   :  { %1749 = vst [vmem:[#allocation13 + $0x40] sm:$0xff] %v1718_v14 }
 0xa01   :  { %v1720_v46 = vpop.f32.mrf.mxu1 }
 0xa02   :  { %v1721_v62 = vadd.f32 %v2168_v17, %v1720_v46 }
 0xa04   :  { %1750 = vst [vmem:[#allocation13 + $0x48] sm:$0xff] %v1721_v62 }
 0xa09   :  { %v1723_v63 = vpop.f32.mrf.mxu1 }
 0xa0a   :  { %v1724_v24 = vadd.f32 %v2168_v17, %v1723_v63 }
 0xa0c   :  { %1751 = vst [vmem:[#allocation13 + $0x50] sm:$0xff] %v1724_v24 }
 0xa11   :  { %v1726_v60 = vpop.f32.mrf.mxu1 }
 0xa12   :  { %v1727_v34 = vadd.f32 %v2168_v17, %v1726_v60 }
 0xa14   :  { %1752 = vst [vmem:[#allocation13 + $0x58] sm:$0xff] %v1727_v34 }
 0xa19   :  { %v1729_v20 = vpop.f32.mrf.mxu1 }
 0xa1a   :  { %v1730_v28 = vadd.f32 %v2168_v17, %v1729_v20 }
 0xa1c   :  { %1753 = vst [vmem:[#allocation13 + $0x60] sm:$0xff] %v1730_v28 }
 0xa21   :  { %v1732_v41 = vpop.f32.mrf.mxu1 }
 0xa22   :  { %v1733_v12 = vadd.f32 %v2168_v17, %v1732_v41 }
 0xa24   :  { %1754 = vst [vmem:[#allocation13 + $0x68] sm:$0xff] %v1733_v12 }
 0xa29   :  { %v1735_v4 = vpop.f32.mrf.mxu1 }
 0xa2a   :  { %v1736_v3 = vadd.f32 %v2168_v17, %v1735_v4 }
 0xa2c   :  { %1755 = vst [vmem:[#allocation13 + $0x70] sm:$0xff] %v1736_v3 }
 0xa31   :  { %v1738_v6 = vpop.f32.mrf.mxu1 }
 0xa32   :  { %v1739_v61 = vadd.f32 %v2168_v17, %v1738_v6 }
 0xa34   :  { %1756 = vst [vmem:[#allocation13 + $0x78] sm:$0xff] %v1739_v61 }
 0xa35   :  { %1769 = dma.vmem_to_hbm [thread:$0]  %s1762_s2, 2048, %s1764_s16, [#allocation7], %s2312_s9, %s2312_s9, %s2313_s10  }
 0xa36   :  { %2309 = dma.done.wait [#allocation7], 2048  }
 0xa37   :  { %2310 = vsyncadd [#allocation7], 4294965248 }
 0xa38   :  { %1774 = vsyncpa [#allocation6], 1 }
 0xa39   :  { %1775 = vsyncpa [#allocation11], 1 }
 0xa3a   :  { %1776 = vsyncpa [#allocation7], 1 }
 0xa3b   :  { %1777 = vsyncpa [#allocation8], 1 }
 0xa3c   :  { %1778 = vsyncmov [#allocation4] }
 0xa3f   :  { %s1779_s17 = vpop.sfrf %1778 }
 0xa40   :  { %p1921_p0 = scmp.ne.s32.totalorder %s1779_s17, 0 }
 0xa42   :  { %1783 = shalt.err (%p1921_p0)  }

</bundles_post_ra>
